<compile_context>
chip_gen: v7x
topology: tpu7x:2x2x1
jax: 0.10.0
libtpu: 0.0.40
codegen_flags: <defaults>
</compile_context>

<pallas_src>
import math

import jax
import jax.numpy as jnp
from jax import lax
from jax.experimental import pallas as pl
from jax.experimental.pallas import tpu as pltpu

# ---------------- Config (mirrors ShopeeModel.__init__ arguments) ----------------
B = 2              # batch
IN_CH = 3          # image channels (NCHW input, like PyTorch)
H = W = 16         # spatial size
FEAT_CH = 64       # final_in_features of the (stand-in) nfnet backbone
FC_DIM = 32        # Config.FC_DIM (use_fc=True path)
N_CLASSES = 16     # Config.CLASSES
MARGIN = 0.5       # Config.MARGIN
SCALE = 30.0       # Config.SCALE
GEM_P = 3.0        # GeM p (p_trainable init value)
GEM_EPS = 1e-6
BN_EPS = 1e-5

COS_M = math.cos(MARGIN)
SIN_M = math.sin(MARGIN)
TH = math.cos(math.pi - MARGIN)
MM = math.sin(math.pi - MARGIN) * MARGIN

VMEM = pl.BlockSpec(memory_space=pltpu.MemorySpace.VMEM)
SMEM = pl.BlockSpec(memory_space=pltpu.MemorySpace.SMEM)


# ---------------- Fused kernel ----------------
def shopee_fused_kernel(x_ref, convw_ref, convb_ref, gemp_ref, label_ref,
                        fcw_ref, fcb_ref, bng_ref, bnb_ref, arcw_ref,
                        logits_ref, loss_ref):
    # ---- Stand-in backbone: 1x1-conv channel projection as VPU broadcast FMAs ----
    # TODO(synk): the full timm 'eca_nfnet_l0' backbone is not reproduced; a 1x1 conv
    # (channel projection) stands in.  K=3 is far too small for the MXU, so it is done
    # on the VPU with a lane-dense (B, FEAT_CH, H*W) output layout.
    x = x_ref[...]                                   # (B, Cin, H*W)  lane dim = H*W (dense)
    w = convw_ref[...]                               # (Cin, FEAT_CH, 1)
    fmap = x[:, 0:1, :] * w[0][None]                 # (B, FEAT_CH, H*W)
    for c in range(1, IN_CH):
        fmap = fmap + x[:, c:c + 1, :] * w[c][None]
    fmap = fmap + convb_ref[...][None]               # (FEAT_CH, 1) bias, broadcasts over lanes

    # ---- GeM pooling (trainable p) + SiLU; spatial reduce is over the lane axis ----
    p = gemp_ref[0]
    xc = jnp.maximum(fmap, GEM_EPS)
    xp = jnp.exp(p * jnp.log(xc))                                   # x**p  (x >= eps > 0), EUP
    pooled = jnp.sum(xp, axis=-1, keepdims=True) * (1.0 / (H * W))  # full-window avg pool
    g = jnp.exp(jnp.log(pooled) * (1.0 / p))                        # pooled**(1/p)
    feat = (g * (1.0 / (1.0 + jnp.exp(-g)))).reshape(B, FEAT_CH)    # SiLU -> (B, FEAT_CH)

    # ---- Dropout(p=0.0) is identity; fc = Linear(FEAT_CH, FC_DIM) + BatchNorm1d ----
    # NOTE: matmuls stay f32 at these toy sizes; cast operands to bf16 (keep f32 accum)
    # once the backbone feature map becomes real-sized.
    h = jnp.dot(feat, fcw_ref[...], preferred_element_type=jnp.float32) + fcb_ref[...]
    # BatchNorm1d — training-mode forward uses batch statistics (biased variance).
    mu = jnp.mean(h, axis=0, keepdims=True)
    var = jnp.mean((h - mu) * (h - mu), axis=0, keepdims=True)
    h = (h - mu) * lax.rsqrt(var + BN_EPS) * bng_ref[...] + bnb_ref[...]

    # ---- ArcMarginProduct: cosine = normalize(h) @ normalize(W)^T ----
    h_n = h / jnp.maximum(jnp.sqrt(jnp.sum(h * h, axis=1, keepdims=True)), 1e-12)
    wt = arcw_ref[...]                               # (FC_DIM, N_CLASSES) = W.T
    w_n = wt / jnp.maximum(jnp.sqrt(jnp.sum(wt * wt, axis=0, keepdims=True)), 1e-12)
    cosine = jnp.dot(h_n, w_n, preferred_element_type=jnp.float32)

    sine = jnp.sqrt(jnp.clip(1.0 - cosine * cosine, 0.0, 1.0))   # clamp -> NaN-safe
    phi = cosine * COS_M - sine * SIN_M
    phi = jnp.where(cosine > TH, phi, cosine - MM)   # easy_margin=False, ls_eps=0.0

    # one-hot(label) built from SMEM scalar reads (labels never touch the vector path)
    cls_iota = lax.broadcasted_iota(jnp.int32, (1, N_CLASSES), 1)
    one_hot = jnp.concatenate(
        [(cls_iota == label_ref[b]).astype(jnp.float32) for b in range(B)], axis=0)

    output = (one_hot * phi + (1.0 - one_hot) * cosine) * SCALE
    logits_ref[...] = output

    # ---- CrossEntropyLoss (mean reduction) ----
    m = jnp.max(output, axis=1, keepdims=True)
    lse = jnp.log(jnp.sum(jnp.exp(output - m), axis=1, keepdims=True)) + m
    nll = -jnp.sum(one_hot * (output - lse), axis=1, keepdims=True)   # (B, 1)
    loss_ref[...] = jnp.sum(nll, axis=0, keepdims=True) * (1.0 / B)


# ---------------- Wrapper ----------------
def shopee_forward(image_nchw, label, params):
    # NCHW is already channel-major for the (B, C, H*W) lane-dense layout used inside the
    # kernel, so the only layout op is a free reshape (no transpose, no extra XLA op).
    x = image_nchw.reshape(B, IN_CH, H * W)

    # TODO(synk): with realistic batch/spatial sizes, add a grid over B / spatial tiles with
    # dimension_semantics=("parallel", ...) so work shards across v7x's 2 TensorCores, and
    # re-derive VMEM tiling against 64 MiB.  At B=2 a single gridless launch is optimal.
    logits, loss = pl.pallas_call(
        shopee_fused_kernel,
        out_shape=(jax.ShapeDtypeStruct((B, N_CLASSES), jnp.float32),
                   jax.ShapeDtypeStruct((1, 1), jnp.float32)),
        in_specs=[VMEM,   # x
                  VMEM,   # conv_w (Cin, FEAT_CH, 1)
                  VMEM,   # conv_b (FEAT_CH, 1)
                  SMEM,   # gem_p (1,)
                  SMEM,   # label (B,) int32
                  VMEM,   # fc_w
                  VMEM,   # fc_b
                  VMEM,   # bn_g
                  VMEM,   # bn_b
                  VMEM],  # arc_wT
        out_specs=(VMEM, VMEM),
    )(x, params["conv_w"], params["conv_b"], params["gem_p"],
      label.astype(jnp.int32),
      params["fc_w"], params["fc_b"], params["bn_g"], params["bn_b"],
      params["arc_wT"])

    return logits, loss[0, 0]


def init_params(key):
    ks = jax.random.split(key, 3)
    # stand-in backbone projection (He-style init); stored as (Cin, FEAT_CH, 1) columns
    conv_w = (jax.random.normal(ks[0], (IN_CH, FEAT_CH), jnp.float32)
              * math.sqrt(2.0 / IN_CH)).reshape(IN_CH, FEAT_CH, 1)
    conv_b = jnp.zeros((FEAT_CH, 1), jnp.float32)
    # fc: xavier_normal_, bias 0
    std = math.sqrt(2.0 / (FEAT_CH + FC_DIM))
    fc_w = jax.random.normal(ks[1], (FEAT_CH, FC_DIM), jnp.float32) * std
    fc_b = jnp.zeros((1, FC_DIM), jnp.float32)
    # bn: weight=1, bias=0
    bn_g = jnp.ones((1, FC_DIM), jnp.float32)
    bn_b = jnp.zeros((1, FC_DIM), jnp.float32)
    # ArcMargin weight: xavier_uniform_, shape (out, in); stored transposed for the kernel
    limit = math.sqrt(6.0 / (N_CLASSES + FC_DIM))
    arc_w = jax.random.uniform(ks[2], (N_CLASSES, FC_DIM), jnp.float32, -limit, limit)
    return dict(conv_w=conv_w, conv_b=conv_b,
                gem_p=jnp.array([GEM_P], jnp.float32),
                fc_w=fc_w, fc_b=fc_b, bn_g=bn_g, bn_b=bn_b,
                arc_wT=arc_w.T)


if __name__ == "__main__":
    key = jax.random.PRNGKey(0)
    k_img, k_lbl, k_par = jax.random.split(key, 3)
    image = jax.random.normal(k_img, (B, IN_CH, H, W), jnp.float32)   # NCHW, like PyTorch
    label = jax.random.randint(k_lbl, (B,), 0, N_CLASSES, jnp.int32)
    params = init_params(k_par)

    logits, loss = jax.jit(shopee_forward)(image, label, params)
    jax.block_until_ready((logits, loss))
    assert logits.shape == (B, N_CLASSES) and loss.shape == ()
    assert bool(jnp.isfinite(loss)) and bool(jnp.all(jnp.isfinite(logits)))
    print("KERNEL_OK")
</pallas_src>

<mosaic_0001>
module attributes {stable_mosaic.version = 11 : i64} {
  func.func @shopee_fused_kernel(%arg0: memref<2x3x256xf32, #tpu.memory_space<vmem>>, %arg1: memref<3x64x1xf32, #tpu.memory_space<vmem>>, %arg2: memref<64x1xf32, #tpu.memory_space<vmem>>, %arg3: memref<1xf32, #tpu.memory_space<smem>>, %arg4: memref<2xi32, #tpu.memory_space<smem>>, %arg5: memref<64x32xf32, #tpu.memory_space<vmem>>, %arg6: memref<1x32xf32, #tpu.memory_space<vmem>>, %arg7: memref<1x32xf32, #tpu.memory_space<vmem>>, %arg8: memref<1x32xf32, #tpu.memory_space<vmem>>, %arg9: memref<32x16xf32, #tpu.memory_space<vmem>>, %arg10: memref<2x16xf32, #tpu.memory_space<vmem>>, %arg11: memref<1x1xf32, #tpu.memory_space<vmem>>) attributes {dimension_semantics = [], scalar_prefetch = 0 : i64, scratch_operands = 0 : i64, tpu.core_type = #tpu.core_type<tc>} {
    %c0 = arith.constant 0 : index
    %c0_0 = arith.constant 0 : index
    %c0_1 = arith.constant 0 : index
    %0 = vector.load %arg0[%c0, %c0_0, %c0_1] : memref<2x3x256xf32, #tpu.memory_space<vmem>>, vector<2x3x256xf32>
    %c0_2 = arith.constant 0 : index
    %c0_3 = arith.constant 0 : index
    %c0_4 = arith.constant 0 : index
    %1 = vector.load %arg1[%c0_2, %c0_3, %c0_4] : memref<3x64x1xf32, #tpu.memory_space<vmem>>, vector<3x64x1xf32>
    %2 = vector.extract_strided_slice %0 {offsets = [0, 0, 0], sizes = [2, 1, 256], strides = [1, 1, 1]} : vector<2x3x256xf32> to vector<2x1x256xf32>
    %3 = vector.extract_strided_slice %1 {offsets = [0, 0, 0], sizes = [1, 64, 1], strides = [1, 1, 1]} : vector<3x64x1xf32> to vector<1x64x1xf32>
    %4 = vector.shape_cast %3 : vector<1x64x1xf32> to vector<64x1xf32>
    %5 = vector.shape_cast %4 : vector<64x1xf32> to vector<1x64x1xf32>
    %6 = vector.broadcast %2 : vector<2x1x256xf32> to vector<2x64x256xf32>
    %7 = vector.broadcast %5 : vector<1x64x1xf32> to vector<2x64x256xf32>
    %8 = arith.mulf %6, %7 : vector<2x64x256xf32>
    %9 = vector.extract_strided_slice %0 {offsets = [0, 1, 0], sizes = [2, 1, 256], strides = [1, 1, 1]} : vector<2x3x256xf32> to vector<2x1x256xf32>
    %10 = vector.extract_strided_slice %1 {offsets = [1, 0, 0], sizes = [1, 64, 1], strides = [1, 1, 1]} : vector<3x64x1xf32> to vector<1x64x1xf32>
    %11 = vector.shape_cast %10 : vector<1x64x1xf32> to vector<64x1xf32>
    %12 = vector.shape_cast %11 : vector<64x1xf32> to vector<1x64x1xf32>
    %13 = vector.broadcast %9 : vector<2x1x256xf32> to vector<2x64x256xf32>
    %14 = vector.broadcast %12 : vector<1x64x1xf32> to vector<2x64x256xf32>
    %15 = arith.mulf %13, %14 : vector<2x64x256xf32>
    %16 = arith.addf %8, %15 : vector<2x64x256xf32>
    %17 = vector.extract_strided_slice %0 {offsets = [0, 2, 0], sizes = [2, 1, 256], strides = [1, 1, 1]} : vector<2x3x256xf32> to vector<2x1x256xf32>
    %18 = vector.extract_strided_slice %1 {offsets = [2, 0, 0], sizes = [1, 64, 1], strides = [1, 1, 1]} : vector<3x64x1xf32> to vector<1x64x1xf32>
    %19 = vector.shape_cast %18 : vector<1x64x1xf32> to vector<64x1xf32>
    %20 = vector.shape_cast %19 : vector<64x1xf32> to vector<1x64x1xf32>
    %21 = vector.broadcast %17 : vector<2x1x256xf32> to vector<2x64x256xf32>
    %22 = vector.broadcast %20 : vector<1x64x1xf32> to vector<2x64x256xf32>
    %23 = arith.mulf %21, %22 : vector<2x64x256xf32>
    %24 = arith.addf %16, %23 : vector<2x64x256xf32>
    %c0_5 = arith.constant 0 : index
    %c0_6 = arith.constant 0 : index
    %25 = vector.load %arg2[%c0_5, %c0_6] : memref<64x1xf32, #tpu.memory_space<vmem>>, vector<64x1xf32>
    %26 = vector.shape_cast %25 : vector<64x1xf32> to vector<1x64x1xf32>
    %27 = vector.broadcast %26 : vector<1x64x1xf32> to vector<2x64x256xf32>
    %28 = arith.addf %24, %27 : vector<2x64x256xf32>
    %c0_7 = arith.constant 0 : index
    %29 = memref.load %arg3[%c0_7] : memref<1xf32, #tpu.memory_space<smem>>
    %cst = arith.constant 9.99999997E-7 : f32
    %30 = vector.broadcast %cst : f32 to vector<2x64x256xf32>
    %31 = arith.maximumf %28, %30 : vector<2x64x256xf32>
    %32 = math.log %31 : vector<2x64x256xf32>
    %33 = vector.broadcast %29 : f32 to vector<2x64x256xf32>
    %34 = arith.mulf %33, %32 : vector<2x64x256xf32>
    %35 = math.exp %34 : vector<2x64x256xf32>
    %cst_8 = arith.constant dense<0.000000e+00> : vector<2x64xf32>
    %36 = vector.multi_reduction <add>, %35, %cst_8 [2] : vector<2x64x256xf32> to vector<2x64xf32>
    %37 = vector.shape_cast %36 : vector<2x64xf32> to vector<2x64x1xf32>
    %cst_9 = arith.constant 3.906250e-03 : f32
    %38 = vector.broadcast %cst_9 : f32 to vector<2x64x1xf32>
    %39 = arith.mulf %37, %38 : vector<2x64x1xf32>
    %40 = math.log %39 : vector<2x64x1xf32>
    %cst_10 = arith.constant 1.000000e+00 : f32
    %41 = arith.divf %cst_10, %29 : f32
    %42 = vector.broadcast %41 : f32 to vector<2x64x1xf32>
    %43 = arith.mulf %40, %42 : vector<2x64x1xf32>
    %44 = math.exp %43 : vector<2x64x1xf32>
    %cst_11 = arith.constant 0.000000e+00 : f32
    %45 = vector.broadcast %cst_11 : f32 to vector<2x64x1xf32>
    %46 = arith.subf %45, %44 : vector<2x64x1xf32>
    %47 = math.exp %46 : vector<2x64x1xf32>
    %cst_12 = arith.constant 1.000000e+00 : f32
    %48 = vector.broadcast %cst_12 : f32 to vector<2x64x1xf32>
    %49 = arith.addf %48, %47 : vector<2x64x1xf32>
    %cst_13 = arith.constant 1.000000e+00 : f32
    %50 = vector.broadcast %cst_13 : f32 to vector<2x64x1xf32>
    %51 = arith.divf %50, %49 : vector<2x64x1xf32>
    %52 = arith.mulf %44, %51 : vector<2x64x1xf32>
    %53 = vector.shape_cast %52 : vector<2x64x1xf32> to vector<2x64xf32>
    %c0_14 = arith.constant 0 : index
    %c0_15 = arith.constant 0 : index
    %54 = vector.load %arg5[%c0_14, %c0_15] : memref<64x32xf32, #tpu.memory_space<vmem>>, vector<64x32xf32>
    %cst_16 = arith.constant dense<0.000000e+00> : vector<2x32xf32>
    %55 = tpu.matmul %53, %54, %cst_16 {dimension_numbers = #tpu.dot_dimension_numbers<[1], [0], [0], [1], [0, 0, 1, 1], [], []>} : vector<2x64xf32>, vector<64x32xf32>, vector<2x32xf32> -> vector<2x32xf32>
    %c0_17 = arith.constant 0 : index
    %c0_18 = arith.constant 0 : index
    %56 = vector.load %arg6[%c0_17, %c0_18] : memref<1x32xf32, #tpu.memory_space<vmem>>, vector<1x32xf32>
    %57 = vector.broadcast %56 : vector<1x32xf32> to vector<2x32xf32>
    %58 = arith.addf %55, %57 : vector<2x32xf32>
    %cst_19 = arith.constant dense<0.000000e+00> : vector<32xf32>
    %59 = vector.multi_reduction <add>, %58, %cst_19 [0] : vector<2x32xf32> to vector<32xf32>
    %60 = vector.shape_cast %59 : vector<32xf32> to vector<1x32xf32>
    %cst_20 = arith.constant 2.000000e+00 : f32
    %61 = vector.broadcast %cst_20 : f32 to vector<1x32xf32>
    %62 = arith.divf %60, %61 : vector<1x32xf32>
    %63 = vector.broadcast %62 : vector<1x32xf32> to vector<2x32xf32>
    %64 = arith.subf %58, %63 : vector<2x32xf32>
    %65 = vector.broadcast %62 : vector<1x32xf32> to vector<2x32xf32>
    %66 = arith.subf %58, %65 : vector<2x32xf32>
    %67 = arith.mulf %64, %66 : vector<2x32xf32>
    %cst_21 = arith.constant dense<0.000000e+00> : vector<32xf32>
    %68 = vector.multi_reduction <add>, %67, %cst_21 [0] : vector<2x32xf32> to vector<32xf32>
    %69 = vector.shape_cast %68 : vector<32xf32> to vector<1x32xf32>
    %cst_22 = arith.constant 2.000000e+00 : f32
    %70 = vector.broadcast %cst_22 : f32 to vector<1x32xf32>
    %71 = arith.divf %69, %70 : vector<1x32xf32>
    %72 = vector.broadcast %62 : vector<1x32xf32> to vector<2x32xf32>
    %73 = arith.subf %58, %72 : vector<2x32xf32>
    %cst_23 = arith.constant 9.99999974E-6 : f32
    %74 = vector.broadcast %cst_23 : f32 to vector<1x32xf32>
    %75 = arith.addf %71, %74 : vector<1x32xf32>
    %76 = math.rsqrt %75 : vector<1x32xf32>
    %77 = vector.broadcast %76 : vector<1x32xf32> to vector<2x32xf32>
    %78 = arith.mulf %73, %77 : vector<2x32xf32>
    %c0_24 = arith.constant 0 : index
    %c0_25 = arith.constant 0 : index
    %79 = vector.load %arg7[%c0_24, %c0_25] : memref<1x32xf32, #tpu.memory_space<vmem>>, vector<1x32xf32>
    %80 = vector.broadcast %79 : vector<1x32xf32> to vector<2x32xf32>
    %81 = arith.mulf %78, %80 : vector<2x32xf32>
    %c0_26 = arith.constant 0 : index
    %c0_27 = arith.constant 0 : index
    %82 = vector.load %arg8[%c0_26, %c0_27] : memref<1x32xf32, #tpu.memory_space<vmem>>, vector<1x32xf32>
    %83 = vector.broadcast %82 : vector<1x32xf32> to vector<2x32xf32>
    %84 = arith.addf %81, %83 : vector<2x32xf32>
    %85 = arith.mulf %84, %84 : vector<2x32xf32>
    %cst_28 = arith.constant dense<0.000000e+00> : vector<2xf32>
    %86 = vector.multi_reduction <add>, %85, %cst_28 [1] : vector<2x32xf32> to vector<2xf32>
    %87 = vector.shape_cast %86 : vector<2xf32> to vector<2x1xf32>
    %88 = math.sqrt %87 : vector<2x1xf32>
    %cst_29 = arith.constant 9.99999996E-13 : f32
    %89 = vector.broadcast %cst_29 : f32 to vector<2x1xf32>
    %90 = arith.maximumf %88, %89 : vector<2x1xf32>
    %91 = vector.broadcast %90 : vector<2x1xf32> to vector<2x32xf32>
    %92 = arith.divf %84, %91 : vector<2x32xf32>
    %c0_30 = arith.constant 0 : index
    %c0_31 = arith.constant 0 : index
    %93 = vector.load %arg9[%c0_30, %c0_31] : memref<32x16xf32, #tpu.memory_space<vmem>>, vector<32x16xf32>
    %94 = arith.mulf %93, %93 : vector<32x16xf32>
    %cst_32 = arith.constant dense<0.000000e+00> : vector<16xf32>
    %95 = vector.multi_reduction <add>, %94, %cst_32 [0] : vector<32x16xf32> to vector<16xf32>
    %96 = vector.shape_cast %95 : vector<16xf32> to vector<1x16xf32>
    %97 = math.sqrt %96 : vector<1x16xf32>
    %cst_33 = arith.constant 9.99999996E-13 : f32
    %98 = vector.broadcast %cst_33 : f32 to vector<1x16xf32>
    %99 = arith.maximumf %97, %98 : vector<1x16xf32>
    %100 = vector.broadcast %99 : vector<1x16xf32> to vector<32x16xf32>
    %101 = arith.divf %93, %100 : vector<32x16xf32>
    %cst_34 = arith.constant dense<0.000000e+00> : vector<2x16xf32>
    %102 = tpu.matmul %92, %101, %cst_34 {dimension_numbers = #tpu.dot_dimension_numbers<[1], [0], [0], [1], [0, 0, 1, 1], [], []>} : vector<2x32xf32>, vector<32x16xf32>, vector<2x16xf32> -> vector<2x16xf32>
    %103 = arith.mulf %102, %102 : vector<2x16xf32>
    %cst_35 = arith.constant 1.000000e+00 : f32
    %104 = vector.broadcast %cst_35 : f32 to vector<2x16xf32>
    %105 = arith.subf %104, %103 : vector<2x16xf32>
    %cst_36 = arith.constant 0.000000e+00 : f32
    %cst_37 = arith.constant 1.000000e+00 : f32
    %106 = vector.broadcast %cst_36 : f32 to vector<2x16xf32>
    %107 = arith.maximumf %106, %105 : vector<2x16xf32>
    %108 = vector.broadcast %cst_37 : f32 to vector<2x16xf32>
    %109 = arith.minimumf %108, %107 : vector<2x16xf32>
    %110 = math.sqrt %109 : vector<2x16xf32>
    %cst_38 = arith.constant 0.87758255 : f32
    %111 = vector.broadcast %cst_38 : f32 to vector<2x16xf32>
    %112 = arith.mulf %102, %111 : vector<2x16xf32>
    %cst_39 = arith.constant 0.47942555 : f32
    %113 = vector.broadcast %cst_39 : f32 to vector<2x16xf32>
    %114 = arith.mulf %110, %113 : vector<2x16xf32>
    %115 = arith.subf %112, %114 : vector<2x16xf32>
    %cst_40 = arith.constant -0.87758255 : f32
    %116 = vector.broadcast %cst_40 : f32 to vector<2x16xf32>
    %117 = arith.cmpf ogt, %102, %116 : vector<2x16xf32>
    %cst_41 = arith.constant 0.239712775 : f32
    %118 = vector.broadcast %cst_41 : f32 to vector<2x16xf32>
    %119 = arith.subf %102, %118 : vector<2x16xf32>
    %120 = arith.select %117, %115, %119 : vector<2x16xi1>, vector<2x16xf32>
    %121 = tpu.iota {dimensions = array<i32: 1>} : vector<1x16xi32>
    %c0_42 = arith.constant 0 : index
    %122 = memref.load %arg4[%c0_42] : memref<2xi32, #tpu.memory_space<smem>>
    %123 = vector.broadcast %122 : i32 to vector<1x16xi32>
    %124 = arith.cmpi eq, %121, %123 : vector<1x16xi32>
    %125 = arith.extui %124 : vector<1x16xi1> to vector<1x16xi32>
    %126 = arith.sitofp %125 : vector<1x16xi32> to vector<1x16xf32>
    %c1 = arith.constant 1 : index
    %127 = memref.load %arg4[%c1] : memref<2xi32, #tpu.memory_space<smem>>
    %128 = vector.broadcast %127 : i32 to vector<1x16xi32>
    %129 = arith.cmpi eq, %121, %128 : vector<1x16xi32>
    %130 = arith.extui %129 : vector<1x16xi1> to vector<1x16xi32>
    %131 = arith.sitofp %130 : vector<1x16xi32> to vector<1x16xf32>
    %132 = tpu.concatenate %126, %131 in 0 : vector<1x16xf32>, vector<1x16xf32> -> vector<2x16xf32>
    %133 = arith.mulf %132, %120 : vector<2x16xf32>
    %cst_43 = arith.constant 1.000000e+00 : f32
    %134 = vector.broadcast %cst_43 : f32 to vector<2x16xf32>
    %135 = arith.subf %134, %132 : vector<2x16xf32>
    %136 = arith.mulf %135, %102 : vector<2x16xf32>
    %137 = arith.addf %133, %136 : vector<2x16xf32>
    %cst_44 = arith.constant 3.000000e+01 : f32
    %138 = vector.broadcast %cst_44 : f32 to vector<2x16xf32>
    %139 = arith.mulf %137, %138 : vector<2x16xf32>
    %c0_45 = arith.constant 0 : index
    %c0_46 = arith.constant 0 : index
    %140 = vector.load %arg10[%c0_45, %c0_46] : memref<2x16xf32, #tpu.memory_space<vmem>>, vector<2x16xf32>
    tpu.vector_store %arg10[%c0_45, %c0_46], %139 {strides = array<i32>} : memref<2x16xf32, #tpu.memory_space<vmem>>, vector<2x16xf32>,
    %cst_47 = arith.constant dense<0xFF800000> : vector<2xf32>
    %141 = vector.multi_reduction <maximumf>, %139, %cst_47 [1] : vector<2x16xf32> to vector<2xf32>
    %142 = vector.shape_cast %141 : vector<2xf32> to vector<2x1xf32>
    %143 = vector.broadcast %142 : vector<2x1xf32> to vector<2x16xf32>
    %144 = arith.subf %139, %143 : vector<2x16xf32>
    %145 = math.exp %144 : vector<2x16xf32>
    %cst_48 = arith.constant dense<0.000000e+00> : vector<2xf32>
    %146 = vector.multi_reduction <add>, %145, %cst_48 [1] : vector<2x16xf32> to vector<2xf32>
    %147 = vector.shape_cast %146 : vector<2xf32> to vector<2x1xf32>
    %148 = math.log %147 : vector<2x1xf32>
    %149 = arith.addf %148, %142 : vector<2x1xf32>
    %150 = vector.broadcast %149 : vector<2x1xf32> to vector<2x16xf32>
    %151 = arith.subf %139, %150 : vector<2x16xf32>
    %152 = arith.mulf %132, %151 : vector<2x16xf32>
    %cst_49 = arith.constant dense<0.000000e+00> : vector<2xf32>
    %153 = vector.multi_reduction <add>, %152, %cst_49 [1] : vector<2x16xf32> to vector<2xf32>
    %154 = vector.shape_cast %153 : vector<2xf32> to vector<2x1xf32>
    %cst_50 = arith.constant 0.000000e+00 : f32
    %155 = vector.broadcast %cst_50 : f32 to vector<2x1xf32>
    %156 = arith.subf %155, %154 : vector<2x1xf32>
    %cst_51 = arith.constant dense<0.000000e+00> : vector<1xf32>
    %157 = vector.multi_reduction <add>, %156, %cst_51 [0] : vector<2x1xf32> to vector<1xf32>
    %158 = vector.shape_cast %157 : vector<1xf32> to vector<1x1xf32>
    %cst_52 = arith.constant 5.000000e-01 : f32
    %159 = vector.broadcast %cst_52 : f32 to vector<1x1xf32>
    %160 = arith.mulf %158, %159 : vector<1x1xf32>
    %c0_53 = arith.constant 0 : index
    %c0_54 = arith.constant 0 : index
    %161 = vector.load %arg11[%c0_53, %c0_54] : memref<1x1xf32, #tpu.memory_space<vmem>>, vector<1x1xf32>
    tpu.vector_store %arg11[%c0_53, %c0_54], %160 {strides = array<i32>} : memref<1x1xf32, #tpu.memory_space<vmem>>, vector<1x1xf32>,
    return
  }
}

</mosaic_0001>

<bundles_post_ra>
// kernel: shopee_forward.1
= control target key start
LH: loop header
LB: loop body
LE: loop exit
PB: predicated region body
PF: predicated region fallthrough
CT: control target
= control target key end

     0   :  { %18 = vsyncpa [#allocation5], 0  ;;  %s2646_s0 = inlined_call_operand.vmem [shape: f32[2,3,256], index: 0, kind: input, shape index: {}]   ;;  %s2647_s1 = inlined_call_operand.vmem [shape: f32[3,64,1], index: 1, kind: input, shape index: {}]   ;;  %s2648_s2 = inlined_call_operand.vmem [shape: f32[64,1], index: 2, kind: input, shape index: {}]   ;;  %s2649_s3 = inlined_call_operand.<no memory space> [shape: f32[1], index: 3, kind: input, shape index: {}]   ;;  %s2650_s4 = inlined_call_operand.vmem [shape: s32[2], index: 4, kind: input, shape index: {}]   ;;  %s2651_s5 = inlined_call_operand.vmem [shape: f32[64,32], index: 5, kind: input, shape index: {}]   ;;  %s2652_s6 = inlined_call_operand.vmem [shape: f32[1,32], index: 6, kind: input, shape index: {}]   ;;  %s2653_s7 = inlined_call_operand.vmem [shape: f32[1,32], index: 7, kind: input, shape index: {}]   ;;  %s2654_s8 = inlined_call_operand.vmem [shape: f32[1,32], index: 8, kind: input, shape index: {}]   ;;  %s2655_s9 = inlined_call_operand.vmem [shape: f32[32,16], index: 9, kind: input, shape index: {}]   ;;  %s2656_s10 = inlined_call_operand.hbm [shape: f32[2,16], index: 10, kind: output, shape index: {0}]   ;;  %s2657_s11 = inlined_call_operand.hbm [shape: f32[1,1], index: 11, kind: output, shape index: {1}]  }
   0x1   :  { %19 = vsyncpa [#allocation4], 0 }
   0x2   :  { %20 = vsyncpa [#allocation8], 0  ;;  %s35_s19 = sshll.u32 %s2650_s4, 4  ;;  %s36_s19 = int_to_ptr.vmem [resolvable:$true] %s35_s19 }
   0x3   :  { %s1815_s20 = scalar_lea.vmem %s36_s19, 16  ;;  %p1820_p1 = scmp.lt.s32.totalorder %s36_s19, %s36_s19 }
   0x4   :  { %p1816_p0 = scmp.ne.s32.totalorder %s36_s19, %s1815_s20  ;;  %p1821_p2 = scmp.lt.s32.totalorder %s1815_s20, %s1815_s20 }
   0x6   :  { %p1822_p3 = por %p1821_p2, %p1820_p1 }
   0x8   :  { %p1823_p4 = pnand %p1822_p3, %p1816_p0 }
   0xa   :  { %1826 = shalt.err (!%p1823_p4)
}
   0xb   :  { %s1877_s21 = smov [#allocation3]  }
   0xc   :  { %38 = dma.vmem_to_smem %s36_s19, 16, %s1877_s21, [#allocation5]  }
   0xd   :  { %1871 = dma.done.wait [#allocation5], 16  }
   0xe   :  { %1872 = vsyncadd [#allocation5], 4294967280 }
   0xf   :  { %52 = sfence }
  0x10   :  { %v63_v0 = vld [vmem:[%s2647_s1 + $0x40] sm:$0xff]  ;;  %v1878_v2 = vmov 0   ;;  %v64_v3 = vld [vmem:[%s2647_s1 + $0x48] sm:$0xff]  ;;  %v65_v5 = vld [vmem:[%s2647_s1 + $0x50] sm:$0xff]  ;;  %v2658_v33 = vlaneseq  ;;  %v2070_v58 = vstv %s2649_s3  ;;  %vm1880_vm0 = vmmov 0   ;;  %s1382_s16 = sld [smem:[#allocation3]] }
  0x11   :  { %v55_v1 = vld [vmem:[%s2647_s1] sm:$0xff]  ;;  %1540 = vset.pattern.permute.xlu1 %v1878_v2  ;;  %1539 = vset.pattern.permute.xlu0 %v1878_v2  ;;  %v56_v4 = vld [vmem:[%s2647_s1 + $0x8] sm:$0xff]  ;;  %v57_v6 = vld [vmem:[%s2647_s1 + $0x10] sm:$0xff]  ;;  %2665 = vst [vmem:[#allocation13_spill] sm:$0xff] %v2070_v58  ;;  %1541 = vrcp.f32 %v2070_v58  ;;  %s1466_s17 = sld [smem:[#allocation3 + $0x1]]  ;;  %vm1392_vm2 = vcmask 1040384  }
  0x12   :  { %227 = vperm.xlu1 %1540, %v63_v0   ;;  %119 = vperm.xlu0 %1539, %v55_v1   ;;  %v66_v7 = vld [vmem:[%s2647_s1 + $0x58] sm:$0xff]  ;;  %v72_v9 = vld [vmem:[%s2647_s1 + $0x88] sm:$0xff]  ;;  %v71_v10 = vld [vmem:[%s2647_s1 + $0x80] sm:$0xff]  ;;  %v2044_v36 = vshrl.u32 %v2658_v33, 7  ;;  %vm1045_vm4 = vcmask 130112   ;;  %vm1052_vm5 = vcmask 195712  }
  0x13   :  { %v58_v8 = vld [vmem:[%s2647_s1 + $0x18] sm:$0xff]  ;;  %v67_v11 = vld [vmem:[%s2647_s1 + $0x60] sm:$0xff]  ;;  %v60_v13 = vld [vmem:[%s2647_s1 + $0x28] sm:$0xff]  ;;  %vm1059_vm6 = vcmask 261312   ;;  %vm1066_vm7 = vcmask 326912   ;;  %vm1073_vm8 = vcmask 392512  }
  0x14   :  { %v59_v12 = vld [vmem:[%s2647_s1 + $0x20] sm:$0xff]  ;;  %v73_v14 = vld [vmem:[%s2647_s1 + $0x90] sm:$0xff]  ;;  %v74_v15 = vld [vmem:[%s2647_s1 + $0x98] sm:$0xff]  ;;  %2664 = vst [vmem:[#allocation12_spill] sm:$0xff] %v2044_v36  ;;  %v191_v39 = vsub.s32 1, %v2044_v36  ;;  %v195_v40 = vsub.s32 5, %v2044_v36 }
  0x15   :  { %v68_v16 = vld [vmem:[%s2647_s1 + $0x68] sm:$0xff]  ;;  %v69_v17 = vld [vmem:[%s2647_s1 + $0x70] sm:$0xff]  ;;  %v62_v19 = vld [vmem:[%s2647_s1 + $0x38] sm:$0xff]  ;;  %v83_v42 = vsub.s32 0, %v2044_v36  ;;  %v87_v43 = vsub.s32 4, %v2044_v36  ;;  %v331_v57 = vsub.s32 2, %v2044_v36 }
  0x16   :  { %232 = vperm.xlu1 %1540, %v64_v3   ;;  %124 = vperm.xlu0 %1539, %v56_v4   ;;  %v61_v18 = vld [vmem:[%s2647_s1 + $0x30] sm:$0xff]  ;;  %v75_v20 = vld [vmem:[%s2647_s1 + $0xa0] sm:$0xff]  ;;  %v76_v21 = vld [vmem:[%s2647_s1 + $0xa8] sm:$0xff]  ;;  %v335_v61 = vsub.s32 6, %v2044_v36  ;;  %vm1080_vm9 = vcmask 458112   ;;  %vm1087_vm10 = vcmask 523712  }
  0x17   :  { %v70_v22 = vld [vmem:[%s2647_s1 + $0x78] sm:$0xff]  ;;  %v470_v23 = vld [vmem:[%s2648_s2 + $0x8] sm:$0xff]  ;;  %v469_v24 = vld [vmem:[%s2648_s2] sm:$0xff]  ;;  %vm1128_vm11 = vcmask 1041409   ;;  %vm1130_vm12 = vcmask 523264   ;;  %vm1203_vm13 = vcmask 254976  }
  0x18   :  { %v471_v25 = vld [vmem:[%s2648_s2 + $0x10] sm:$0xff]  ;;  %v472_v27 = vld [vmem:[%s2648_s2 + $0x18] sm:$0xff]  ;;  %v474_v29 = vld [vmem:[%s2648_s2 + $0x28] sm:$0xff]  ;;  %vm1264_vm14 = vcmask 130048  }
  0x19   :  { %v77_v26 = vld [vmem:[%s2647_s1 + $0xb0] sm:$0xff]  ;;  %v78_v28 = vld [vmem:[%s2647_s1 + $0xb8] sm:$0xff]  ;;  %v473_v30 = vld [vmem:[%s2648_s2 + $0x20] sm:$0xff] }
  0x1a   :  { %237 = vperm.xlu1 %1540, %v65_v5   ;;  %129 = vperm.xlu0 %1539, %v57_v6   ;;  %v476_v31 = vld [vmem:[%s2648_s2 + $0x38] sm:$0xff]  ;;  %v475_v32 = vld [vmem:[%s2648_s2 + $0x30] sm:$0xff]  ;;  %v53_v41 = vld [vmem:[%s2646_s0] sm:$0x77] }
  0x1b   :  { %v54_v46 = vld [vmem:[%s2646_s0 + $0x8] sm:$0x77]  ;;  %v192_v47 = vrot.slane %v53_v41, %v191_v39  ;;  %v196_v48 = vrot.slane %v53_v41, %v195_v40  ;;  %v84_v50 = vrot.slane %v53_v41, %v83_v42  ;;  %v88_v51 = vrot.slane %v53_v41, %v87_v43 }
  0x1c   :  { %v200_v49 = vrot.slane %v54_v46, %v191_v39  ;;  %v92_v52 = vrot.slane %v54_v46, %v83_v42  ;;  %v204_v55 = vrot.slane %v54_v46, %v195_v40  ;;  %v96_v56 = vrot.slane %v54_v46, %v87_v43 }
  0x1d   :  { %v2072_v59 = vrot.slane %v192_v47, %v191_v39  ;;  %v2074_v60 = vrot.slane %v196_v48, %v191_v39  ;;  %v2080_v63 = vrot.slane %v84_v50, %v83_v42  ;;  %v2082_v0 = vrot.slane %v88_v51, %v83_v42 }
  0x1e   :  { %242 = vperm.xlu1 %1540, %v66_v7   ;;  %134 = vperm.xlu0 %1539, %v58_v8   ;;  %v2078_v62 = vrot.slane %v200_v49, %v191_v39  ;;  %v2084_v1 = vrot.slane %v92_v52, %v83_v42  ;;  %v2090_v4 = vrot.slane %v204_v55, %v191_v39 }
  0x1f   :  { %v2092_v5 = vrot.slane %v96_v56, %v83_v42  ;;  %v332_v6 = vrot.slane %v53_v41, %v331_v57  ;;  %v340_v7 = vrot.slane %v54_v46, %v331_v57 }
  0x22   :  { %372 = vperm.xlu1 %1540, %v72_v9   ;;  %367 = vperm.xlu0 %1539, %v71_v10   ;;  %v336_v10 = vrot.slane %v53_v41, %v335_v61 }
  0x26   :  { %247 = vperm.xlu1 %1540, %v67_v11   ;;  %139 = vperm.xlu0 %1539, %v59_v12   ;;  %v344_v11 = vrot.slane %v54_v46, %v335_v61 }
  0x2a   :  { %144 = vperm.xlu1 %1540, %v60_v13   ;;  %377 = vperm.xlu0 %1539, %v73_v14  }
  0x2e   :  { %382 = vperm.xlu1 %1540, %v74_v15   ;;  %252 = vperm.xlu0 %1539, %v68_v16  }
  0x32   :  { %257 = vperm.xlu1 %1540, %v69_v17   ;;  %149 = vperm.xlu0 %1539, %v61_v18   ;;  %v2104_v18 = vrot.slane %v332_v6, %v331_v57 }
  0x36   :  { %154 = vperm.xlu1 %1540, %v62_v19   ;;  %387 = vperm.xlu0 %1539, %v75_v20   ;;  %v2107_v20 = vrot.slane %v336_v10, %v331_v57 }
  0x3a   :  { %392 = vperm.xlu1 %1540, %v76_v21   ;;  %262 = vperm.xlu0 %1539, %v70_v22   ;;  %v2109_v21 = vrot.slane %v340_v7, %v331_v57  ;;  %v2111_v22 = vrot.slane %v344_v11, %v331_v57 }
  0x3e   :  { %484 = vperm.xlu1 %1540, %v470_v23   ;;  %479 = vperm.xlu0 %1539, %v469_v24  }
  0x42   :  { %489 = vperm.xlu1 %1540, %v471_v25   ;;  %397 = vperm.xlu0 %1539, %v77_v26  }
  0x46   :  { %494 = vperm.xlu1 %1540, %v472_v27   ;;  %402 = vperm.xlu0 %1539, %v78_v28  }
  0x4a   :  { %504 = vperm.xlu1 %1540, %v474_v29   ;;  %499 = vperm.xlu0 %1539, %v473_v30   ;;  %v1542_v29 = vpop.eup %1541 }
  0x4b   :  { %1530 = vpush %v1542_v29 }
  0x4e   :  { %514 = vperm.xlu1 %1540, %v476_v31   ;;  %509 = vperm.xlu0 %1539, %v475_v32  }
  0x91   :  { %v228_v34 = vpop.permute.xlu1 %227  ;;  %v120_v35 = vpop.permute.xlu0 %119 }
  0x92   :  { %v265_v8 = vmul.f32 %v228_v34, %v2072_v59  ;;  %v266_v9 = vmul.f32 %v228_v34, %v2074_v60  ;;  %v281_v12 = vmul.f32 %v228_v34, %v2078_v62  ;;  %v157_v13 = vmul.f32 %v120_v35, %v2080_v63 }
  0x93   :  { %v158_v14 = vmul.f32 %v120_v35, %v2082_v0  ;;  %v173_v15 = vmul.f32 %v120_v35, %v2084_v1  ;;  %v282_v19 = vmul.f32 %v228_v34, %v2090_v4  ;;  %v174_v23 = vmul.f32 %v120_v35, %v2092_v5 }
  0x94   :  { %v2114_v24 = vadd.f32 %v265_v8, %v157_v13 }
  0x95   :  { %v233_v37 = vpop.permute.xlu1 %232  ;;  %v2046_v38 = vpop.permute.xlu0 %124  ;;  %v2116_v25 = vadd.f32 %v266_v9, %v158_v14  ;;  %v2118_v26 = vadd.f32 %v281_v12, %v173_v15  ;;  %v314_v7 = vadd.f32 %v282_v19, %v174_v23 }
  0x96   :  { %v267_v30 = vmul.f32 %v233_v37, %v2072_v59  ;;  %v268_v31 = vmul.f32 %v233_v37, %v2074_v60  ;;  %v283_v32 = vmul.f32 %v233_v37, %v2078_v62  ;;  %v284_v34 = vmul.f32 %v233_v37, %v2090_v4 }
  0x97   :  { %v159_v35 = vmul.f32 %v2046_v38, %v2080_v63  ;;  %v160_v39 = vmul.f32 %v2046_v38, %v2082_v0  ;;  %v175_v40 = vmul.f32 %v2046_v38, %v2084_v1  ;;  %v176_v41 = vmul.f32 %v2046_v38, %v2092_v5 }
  0x99   :  { %v2055_v44 = vpop.permute.xlu1 %237  ;;  %v2057_v45 = vpop.permute.xlu0 %129  ;;  %v299_v8 = vadd.f32 %v267_v30, %v159_v35  ;;  %v300_v9 = vadd.f32 %v268_v31, %v160_v39  ;;  %v315_v10 = vadd.f32 %v283_v32, %v175_v40  ;;  %v316_v11 = vadd.f32 %v284_v34, %v176_v41 }
  0x9a   :  { %v269_v42 = vmul.f32 %v2055_v44, %v2072_v59  ;;  %v270_v43 = vmul.f32 %v2055_v44, %v2074_v60  ;;  %v285_v37 = vmul.f32 %v2055_v44, %v2078_v62  ;;  %v286_v46 = vmul.f32 %v2055_v44, %v2090_v4 }
  0x9b   :  { %v161_v47 = vmul.f32 %v2057_v45, %v2080_v63  ;;  %v162_v48 = vmul.f32 %v2057_v45, %v2082_v0  ;;  %v177_v38 = vmul.f32 %v2057_v45, %v2084_v1  ;;  %v178_v49 = vmul.f32 %v2057_v45, %v2092_v5 }
  0x9d   :  { %v2062_v53 = vpop.permute.xlu1 %242  ;;  %v2064_v54 = vpop.permute.xlu0 %134  ;;  %v301_v12 = vadd.f32 %v269_v42, %v161_v47  ;;  %v302_v13 = vadd.f32 %v270_v43, %v162_v48  ;;  %v317_v29 = vadd.f32 %v285_v37, %v177_v38 }
  0x9e   :  { %v271_v52 = vmul.f32 %v2062_v53, %v2072_v59  ;;  %v272_v44 = vmul.f32 %v2062_v53, %v2074_v60  ;;  %v163_v55 = vmul.f32 %v2064_v54, %v2080_v63  ;;  %v164_v56 = vmul.f32 %v2064_v54, %v2082_v0 }
  0x9f   :  { %v287_v57 = vmul.f32 %v2062_v53, %v2078_v62  ;;  %v288_v45 = vmul.f32 %v2062_v53, %v2090_v4  ;;  %v179_v61 = vmul.f32 %v2064_v54, %v2084_v1  ;;  %v180_v6 = vmul.f32 %v2064_v54, %v2092_v5 }
  0xa0   :  { %v318_v53 = vadd.f32 %v286_v46, %v178_v49  ;;  %v303_v33 = vadd.f32 %v271_v52, %v163_v55  ;;  %v304_v36 = vadd.f32 %v272_v44, %v164_v56 }
  0xa1   :  { %v2086_v2 = vpop.permute.xlu1 %372  ;;  %v2088_v3 = vpop.permute.xlu0 %367  ;;  %v2178_v54 = vadd.f32 %v288_v45, %v180_v6 }
  0xa2   :  { %v407_v14 = vmul.f32 %v2086_v2, %v2104_v18  ;;  %v408_v19 = vmul.f32 %v2086_v2, %v2107_v20  ;;  %v423_v23 = vmul.f32 %v2086_v2, %v2109_v21  ;;  %v424_v30 = vmul.f32 %v2086_v2, %v2111_v22 }
  0xa3   :  { %v405_v31 = vmul.f32 %v2088_v3, %v2104_v18  ;;  %v406_v32 = vmul.f32 %v2088_v3, %v2107_v20  ;;  %v421_v34 = vmul.f32 %v2088_v3, %v2109_v21  ;;  %v422_v35 = vmul.f32 %v2088_v3, %v2111_v22 }
  0xa4   :  { %v439_v2 = vadd.f32 %v407_v14, %v299_v8  ;;  %v440_v48 = vadd.f32 %v408_v19, %v300_v9  ;;  %v455_v38 = vadd.f32 %v423_v23, %v315_v10  ;;  %v2212_v52 = vadd.f32 %v424_v30, %v316_v11 }
  0xa5   :  { %v2100_v16 = vpop.permute.xlu1 %247  ;;  %v2102_v17 = vpop.permute.xlu0 %139  ;;  %v2215_v44 = vadd.f32 %v405_v31, %v2114_v24  ;;  %v2218_v55 = vadd.f32 %v406_v32, %v2116_v25  ;;  %v2221_v56 = vadd.f32 %v421_v34, %v2118_v26 }
  0xa6   :  { %v273_v39 = vmul.f32 %v2100_v16, %v2072_v59  ;;  %v274_v40 = vmul.f32 %v2100_v16, %v2074_v60  ;;  %v289_v42 = vmul.f32 %v2100_v16, %v2078_v62  ;;  %v165_v43 = vmul.f32 %v2102_v17, %v2080_v63 }
  0xa7   :  { %v166_v37 = vmul.f32 %v2102_v17, %v2082_v0  ;;  %v181_v3 = vmul.f32 %v2102_v17, %v2084_v1  ;;  %v290_v46 = vmul.f32 %v2100_v16, %v2090_v4  ;;  %v182_v47 = vmul.f32 %v2102_v17, %v2092_v5 }
  0xa8   :  { %v305_v24 = vadd.f32 %v273_v39, %v165_v43 }
  0xa9   :  { %v2120_v27 = vpop.permute.xlu1 %144  ;;  %v2122_v28 = vpop.permute.xlu0 %377  ;;  %v306_v6 = vadd.f32 %v274_v40, %v166_v37  ;;  %v321_v25 = vadd.f32 %v289_v42, %v181_v3  ;;  %v2235_v8 = vadd.f32 %v290_v46, %v182_v47 }
  0xaa   :  { %v409_v16 = vmul.f32 %v2122_v28, %v2104_v18  ;;  %v410_v17 = vmul.f32 %v2122_v28, %v2107_v20  ;;  %v426_v26 = vmul.f32 %v2122_v28, %v2111_v22  ;;  %v168_v14 = vmul.f32 %v2120_v27, %v2082_v0 }
  0xab   :  { %v184_v19 = vmul.f32 %v2120_v27, %v2092_v5 }
  0xac   :  { %v2253_v30 = vadd.f32 %v409_v16, %v301_v12  ;;  %v2255_v31 = vadd.f32 %v410_v17, %v302_v13  ;;  %v2265_v43 = vadd.f32 %v426_v26, %v318_v53 }
  0xad   :  { %v2152_v50 = vpop.permute.xlu1 %382  ;;  %v2154_v51 = vpop.permute.xlu0 %252 }
  0xae   :  { %2666 = vst [vmem:[#allocation14_spill] sm:$0xff] %v2154_v51  ;;  %v319_v51 = vadd.f32 %v287_v57, %v179_v61  ;;  %v425_v57 = vmul.f32 %v2122_v28, %v2109_v21  ;;  %v2231_v61 = vadd.f32 %v422_v35, %v314_v7  ;;  %v411_v9 = vmul.f32 %v2152_v50, %v2104_v18 }
  0xaf   :  { %v412_v10 = vmul.f32 %v2152_v50, %v2107_v20  ;;  %v427_v11 = vmul.f32 %v2152_v50, %v2109_v21  ;;  %v167_v7 = vmul.f32 %v2120_v27, %v2080_v63  ;;  %v183_v28 = vmul.f32 %v2120_v27, %v2084_v1 }
  0xb0   :  { %v428_v23 = vmul.f32 %v2152_v50, %v2111_v22  ;;  %v2257_v32 = vadd.f32 %v425_v57, %v317_v29  ;;  %v2269_v12 = vadd.f32 %v411_v9, %v303_v33 }
  0xb1   :  { %v2174_v15 = vpop.permute.xlu1 %257  ;;  %v2176_v58 = vpop.permute.xlu0 %149  ;;  %v2271_v13 = vadd.f32 %v412_v10, %v304_v36  ;;  %v2273_v29 = vadd.f32 %v427_v11, %v319_v51 }
  0xb2   :  { %v277_v37 = vmul.f32 %v2174_v15, %v2072_v59  ;;  %v278_v3 = vmul.f32 %v2174_v15, %v2074_v60  ;;  %v169_v46 = vmul.f32 %v2176_v58, %v2080_v63  ;;  %v170_v53 = vmul.f32 %v2176_v58, %v2082_v0 }
  0xb3   :  { %v293_v33 = vmul.f32 %v2174_v15, %v2078_v62  ;;  %v185_v36 = vmul.f32 %v2176_v58, %v2084_v1  ;;  %v2288_v47 = vadd.f32 %v428_v23, %v2178_v54  ;;  %v294_v57 = vmul.f32 %v2174_v15, %v2090_v4 }
  0xb4   :  { %v186_v26 = vmul.f32 %v2176_v58, %v2092_v5 }
  0xb5   :  { %v2198_v41 = vpop.permute.xlu1 %154  ;;  %v388_v49 = vpop.permute.xlu0 %387  ;;  %v2667_v34 = vld [vmem:[#allocation14_spill] sm:$0xff]  ;;  %v2301_v23 = vadd.f32 %v293_v33, %v185_v36 }
  0xb6   :  { %v275_v35 = vmul.f32 %v2667_v34, %v2072_v59  ;;  %v276_v39 = vmul.f32 %v2667_v34, %v2074_v60  ;;  %v291_v40 = vmul.f32 %v2667_v34, %v2078_v62  ;;  %v292_v50 = vmul.f32 %v2667_v34, %v2090_v4  ;;  %2668 = vst [vmem:[#allocation14_spill] sm:$0xff] %v2273_v29 }
  0xb7   :  { %v413_v11 = vmul.f32 %v388_v49, %v2104_v18  ;;  %v414_v34 = vmul.f32 %v388_v49, %v2107_v20  ;;  %v2296_v29 = vadd.f32 %v277_v37, %v169_v46  ;;  %v429_v54 = vmul.f32 %v388_v49, %v2109_v21 }
  0xb8   :  { %v307_v16 = vadd.f32 %v275_v35, %v167_v7  ;;  %v308_v17 = vadd.f32 %v276_v39, %v168_v14  ;;  %v323_v9 = vadd.f32 %v291_v40, %v183_v28  ;;  %v324_v10 = vadd.f32 %v292_v50, %v184_v19 }
  0xb9   :  { %v2229_v45 = vpop.permute.xlu1 %392  ;;  %v263_v42 = vpop.permute.xlu0 %262  ;;  %v430_v15 = vmul.f32 %v388_v49, %v2111_v22  ;;  %v2304_v28 = vadd.f32 %v294_v57, %v186_v26  ;;  %v171_v19 = vmul.f32 %v2198_v41, %v2080_v63  ;;  %v172_v39 = vmul.f32 %v2198_v41, %v2082_v0 }
  0xba   :  { %v187_v40 = vmul.f32 %v2198_v41, %v2084_v1  ;;  %v415_v49 = vmul.f32 %v2229_v45, %v2104_v18  ;;  %v2318_v37 = vadd.f32 %v414_v34, %v306_v6  ;;  %v416_v63 = vmul.f32 %v2229_v45, %v2107_v20 }
  0xbb   :  { %v2323_v46 = vadd.f32 %v429_v54, %v321_v25  ;;  %v431_v1 = vmul.f32 %v2229_v45, %v2109_v21  ;;  %v280_v6 = vmul.f32 %v263_v42, %v2074_v60  ;;  %v295_v25 = vmul.f32 %v263_v42, %v2078_v62 }
  0xbc   :  { %v296_v33 = vmul.f32 %v263_v42, %v2090_v4 }
  0xbd   :  { %v485_v27 = vpop.permute.xlu1 %484  ;;  %v480_v14 = vpop.permute.xlu0 %479 }
  0xbe   :  { %v519_v51 = vadd.f32 %v485_v27, %v439_v2  ;;  %v2298_v2 = vadd.f32 %v278_v3, %v170_v53  ;;  %v520_v7 = vadd.f32 %v485_v27, %v440_v48  ;;  %v535_v35 = vadd.f32 %v485_v27, %v455_v38 }
  0xbf   :  { %v188_v48 = vmul.f32 %v2198_v41, %v2092_v5  ;;  %v2316_v38 = vadd.f32 %v413_v11, %v305_v24  ;;  %v536_v3 = vadd.f32 %v485_v27, %v2212_v52  ;;  %v2328_v5 = vadd.f32 %v430_v15, %v2235_v8 }
  0xc0   :  { %v552_v58 = vmax.f32 %v519_v51, 1e-06  ;;  %v553_v0 = vmax.f32 %v520_v7, 1e-06  ;;  %v568_v53 = vmax.f32 %v535_v35, 1e-06  ;;  %v432_v41 = vmul.f32 %v2229_v45, %v2111_v22 }
  0xc1   :  { %v490_v50 = vpop.permute.xlu1 %489  ;;  %v279_v24 = vmul.f32 %v263_v42, %v2072_v59  ;;  %v517_v52 = vadd.f32 %v480_v14, %v2215_v44  ;;  %v398_v27 = vpop.permute.xlu0 %397  ;;  %v518_v36 = vadd.f32 %v480_v14, %v2218_v55  ;;  %v447_v51 = vadd.f32 %v415_v49, %v307_v16 }
  0xc2   :  { %1543 = vlog2.f32 %v552_v58  ;;  %v569_v57 = vmax.f32 %v536_v3, 1e-06  ;;  %v533_v8 = vadd.f32 %v480_v14, %v2221_v56  ;;  %v448_v45 = vadd.f32 %v416_v63, %v308_v17 }
  0xc3   :  { %1545 = vlog2.f32 %v553_v0  ;;  %v534_v59 = vadd.f32 %v480_v14, %v2231_v61  ;;  %v521_v60 = vadd.f32 %v490_v50, %v2253_v30  ;;  %v463_v44 = vadd.f32 %v431_v1, %v323_v9 }
  0xc4   :  { %1547 = vlog2.f32 %v568_v53  ;;  %v2341_v11 = vadd.f32 %v279_v24, %v171_v19  ;;  %v550_v62 = vmax.f32 %v517_v52, 1e-06  ;;  %v522_v4 = vadd.f32 %v490_v50, %v2255_v31 }
  0xc5   :  { %v495_v26 = vpop.permute.xlu1 %494  ;;  %v464_v42 = vadd.f32 %v432_v41, %v324_v10  ;;  %v2344_v55 = vadd.f32 %v280_v6, %v172_v39  ;;  %v551_v16 = vmax.f32 %v518_v36, 1e-06  ;;  %v537_v34 = vadd.f32 %v490_v50, %v2257_v32  ;;  %v403_v30 = vpop.permute.xlu0 %402  ;;  %v2669_v39 = vld [vmem:[#allocation14_spill] sm:$0xff] }
  0xc6   :  { %v538_v56 = vadd.f32 %v490_v50, %v2265_v43  ;;  %v2348_v17 = vadd.f32 %v295_v25, %v187_v40  ;;  %v2350_v54 = vadd.f32 %v296_v33, %v188_v48  ;;  %1549 = vlog2.f32 %v569_v57 }
  0xc7   :  { %v566_v61 = vmax.f32 %v533_v8, 1e-06  ;;  %v567_v9 = vmax.f32 %v534_v59, 1e-06  ;;  %v554_v7 = vmax.f32 %v521_v60, 1e-06  ;;  %v2353_v14 = vmul.f32 %v398_v27, %v2104_v18 }
  0xc8   :  { %v523_v31 = vadd.f32 %v495_v26, %v2269_v12  ;;  %1551 = vlog2.f32 %v550_v62  ;;  %v555_v10 = vmax.f32 %v522_v4, 1e-06  ;;  %v2357_v32 = vmul.f32 %v398_v27, %v2107_v20 }
  0xc9   :  { %v524_v43 = vadd.f32 %v495_v26, %v2271_v13  ;;  %v505_v15 = vpop.permute.xlu1 %504  ;;  %1553 = vlog2.f32 %v551_v16  ;;  %v570_v58 = vmax.f32 %v537_v34, 1e-06  ;;  %v571_v19 = vmax.f32 %v538_v56, 1e-06  ;;  %v500_v41 = vpop.permute.xlu0 %499 }
  0xca   :  { %v539_v40 = vadd.f32 %v495_v26, %v2669_v39  ;;  %1555 = vlog2.f32 %v566_v61  ;;  %v2362_v50 = vmul.f32 %v398_v27, %v2109_v21  ;;  %v2365_v12 = vmul.f32 %v398_v27, %v2111_v22 }
  0xcb   :  { %v540_v48 = vadd.f32 %v495_v26, %v2288_v47  ;;  %1557 = vlog2.f32 %v567_v9  ;;  %v556_v49 = vmax.f32 %v523_v31, 1e-06  ;;  %v419_v13 = vmul.f32 %v403_v30, %v2104_v18  ;;  %v2670_v26 = vld [vmem:[#allocation13_spill] sm:$0xff] }
  0xcc   :  { %v1544_v35 = vpop.eup %1543  ;;  %v527_v63 = vadd.f32 %v505_v15, %v447_v51  ;;  %1559 = vlog2.f32 %v554_v7  ;;  %v557_v1 = vmax.f32 %v524_v43, 1e-06  ;;  %v420_v53 = vmul.f32 %v403_v30, %v2107_v20 }
  0xcd   :  { %v1546_v3 = vpop.eup %1545  ;;  %v587_v0 = vmul.f32 0.6931472, %v1544_v35  ;;  %1561 = vlog2.f32 %v555_v10  ;;  %v572_v6 = vmax.f32 %v539_v40, 1e-06  ;;  %v528_v52 = vadd.f32 %v505_v15, %v448_v45  ;;  %v515_v9 = vpop.permute.xlu1 %514 }
  0xce   :  { %v1548_v24 = vpop.eup %1547  ;;  %v543_v27 = vadd.f32 %v505_v15, %v463_v44  ;;  %1563 = vlog2.f32 %v570_v58  ;;  %v573_v25 = vmax.f32 %v540_v48, 1e-06  ;;  %v435_v47 = vmul.f32 %v403_v30, %v2109_v21 }
  0xcf   :  { %v544_v33 = vadd.f32 %v505_v15, %v464_v42  ;;  %v589_v36 = vmul.f32 0.6931472, %v1546_v3  ;;  %1565 = vlog2.f32 %v571_v19  ;;  %v560_v18 = vmax.f32 %v527_v63, 1e-06 }
  0xd0   :  { %v525_v51 = vadd.f32 %v500_v41, %v2316_v38  ;;  %v1550_v57 = vpop.eup %1549  ;;  %v619_v8 = vmul.f32 0.6931472, %v1548_v24  ;;  %v649_v20 = vmul.f32 %v2670_v26, %v587_v0  ;;  %1567 = vlog2.f32 %v556_v49 }
  0xd1   :  { %v526_v59 = vadd.f32 %v500_v41, %v2318_v37  ;;  %1569 = vlog2.f32 %v557_v1  ;;  %v436_v45 = vmul.f32 %v403_v30, %v2111_v22  ;;  %v561_v60 = vmax.f32 %v528_v52, 1e-06 }
  0xd2   :  { %v576_v44 = vmax.f32 %v543_v27, 1e-06  ;;  %v1552_v62 = vpop.eup %1551  ;;  %1571 = vlog2.f32 %v572_v6  ;;  %v577_v21 = vmax.f32 %v544_v33, 1e-06  ;;  %v541_v4 = vadd.f32 %v500_v41, %v2323_v46 }
  0xd3   :  { %v542_v42 = vadd.f32 %v500_v41, %v2328_v5  ;;  %v1554_v38 = vpop.eup %1553  ;;  %v2377_v16 = vmul.f32 0.6931472, %v1550_v57  ;;  %v650_v34 = vmul.f32 %v2670_v26, %v589_v36  ;;  %1573 = vlog2.f32 %v573_v25  ;;  %v510_v41 = vpop.permute.xlu0 %509 }
  0xd4   :  { %v558_v56 = vmax.f32 %v525_v51, 1e-06  ;;  %v1556_v37 = vpop.eup %1555  ;;  %v2381_v61 = vmul.f32 %v2670_v26, %v619_v8  ;;  %v2383_v22 = vmul.f32 1.442695, %v649_v20  ;;  %1575 = vlog2.f32 %v560_v18 }
  0xd5   :  { %v559_v30 = vmax.f32 %v526_v59, 1e-06  ;;  %v1558_v7 = vpop.eup %1557  ;;  %v583_v46 = vmul.f32 0.6931472, %v1552_v62  ;;  %1577 = vlog2.f32 %v561_v60  ;;  %v451_v5 = vadd.f32 %v419_v13, %v2341_v11 }
  0xd6   :  { %v452_v31 = vadd.f32 %v420_v53, %v2344_v55  ;;  %v1560_v10 = vpop.eup %1559  ;;  %1579 = vlog2.f32 %v576_v44  ;;  %v574_v43 = vmax.f32 %v541_v4, 1e-06  ;;  %v467_v15 = vadd.f32 %v435_v47, %v2348_v17 }
  0xd7   :  { %v468_v35 = vadd.f32 %v436_v45, %v2350_v54  ;;  %v1562_v58 = vpop.eup %1561  ;;  %v575_v19 = vmax.f32 %v542_v42, 1e-06  ;;  %1581 = vlog2.f32 %v558_v56  ;;  %v531_v39 = vadd.f32 %v515_v9, %v451_v5 }
  0xd8   :  { %v532_v40 = vadd.f32 %v515_v9, %v452_v31  ;;  %v1564_v48 = vpop.eup %1563  ;;  %v685_v49 = vmul.f32 1.442695, %v650_v34  ;;  %1583 = vlog2.f32 %v559_v30  ;;  %v547_v63 = vadd.f32 %v515_v9, %v467_v15 }
  0xd9   :  { %v548_v3 = vadd.f32 %v515_v9, %v468_v35  ;;  %v1566_v11 = vpop.eup %1565  ;;  %v585_v13 = vmul.f32 0.6931472, %v1554_v38  ;;  %1585 = vlog2.f32 %v577_v21  ;;  %v564_v55 = vmax.f32 %v531_v39, 1e-06 }
  0xda   :  { %v565_v0 = vmax.f32 %v532_v40, 1e-06  ;;  %v1568_v1 = vpop.eup %1567  ;;  %v615_v53 = vmul.f32 0.6931472, %v1556_v37  ;;  %v591_v17 = vmul.f32 0.6931472, %v1560_v10  ;;  %1587 = vlog2.f32 %v574_v43 }
  0xdb   :  { %v580_v54 = vmax.f32 %v547_v63, 1e-06  ;;  %v1570_v24 = vpop.eup %1569  ;;  %v593_v6 = vmul.f32 0.6931472, %v1562_v58  ;;  %1589 = vlog2.f32 %v575_v19  ;;  %v581_v52 = vmax.f32 %v548_v3, 1e-06 }
  0xdc   :  { %v449_v27 = vadd.f32 %v2353_v14, %v2296_v29  ;;  %v1572_v25 = vpop.eup %1571  ;;  %v617_v47 = vmul.f32 0.6931472, %v1558_v7  ;;  %v647_v33 = vmul.f32 %v2670_v26, %v583_v46  ;;  %1591 = vlog2.f32 %v564_v55 }
  0xdd   :  { %v450_v36 = vadd.f32 %v2357_v32, %v2298_v2  ;;  %v2394_v18 = vpop.eup %1573  ;;  %1593 = vlog2.f32 %v565_v0  ;;  %v465_v51 = vadd.f32 %v2362_v50, %v2301_v23  ;;  %v466_v57 = vadd.f32 %v2365_v12, %v2304_v28 }
  0xde   :  { %v529_v8 = vadd.f32 %v510_v41, %v449_v27  ;;  %v1576_v20 = vpop.eup %1575  ;;  %v648_v29 = vmul.f32 %v2670_v26, %v585_v13  ;;  %v651_v14 = vmul.f32 %v2670_v26, %v591_v17  ;;  %1595 = vlog2.f32 %v580_v54 }
  0xdf   :  { %v530_v59 = vadd.f32 %v510_v41, %v450_v36  ;;  %v1578_v45 = vpop.eup %1577  ;;  %v652_v2 = vmul.f32 %v2670_v26, %v593_v6  ;;  %1597 = vlog2.f32 %v581_v52  ;;  %v545_v32 = vadd.f32 %v510_v41, %v465_v51 }
  0xe0   :  { %v546_v60 = vadd.f32 %v510_v41, %v466_v57  ;;  %v2403_v44 = vpop.eup %1579  ;;  %v595_v23 = vmul.f32 0.6931472, %v1568_v1  ;;  %v562_v50 = vmax.f32 %v529_v8, 1e-06  ;;  %1599 = vpow2.f32 %v2383_v22 }
  0xe1   :  { %v563_v62 = vmax.f32 %v530_v59, 1e-06  ;;  %v1582_v28 = vpop.eup %1581  ;;  %v597_v12 = vmul.f32 0.6931472, %v1570_v24  ;;  %v578_v21 = vmax.f32 %v545_v32, 1e-06  ;;  %1601 = vpow2.f32 %v685_v49 }
  0xe2   :  { %v579_v4 = vmax.f32 %v546_v60, 1e-06  ;;  %v1584_v42 = vpop.eup %1583  ;;  %v663_v38 = vmul.f32 %v2670_v26, %v615_v53  ;;  %v664_v34 = vmul.f32 %v2670_v26, %v617_v47  ;;  %v679_v56 = vmul.f32 1.442695, %v647_v33 }
  0xe3   :  { %1603 = vlog2.f32 %v562_v50  ;;  %v2408_v37 = vpop.eup %1585  ;;  %v681_v30 = vmul.f32 1.442695, %v648_v29  ;;  %v623_v9 = vmul.f32 0.6931472, %v1564_v48  ;;  %v625_v7 = vmul.f32 0.6931472, %v1566_v11 }
  0xe4   :  { %1605 = vlog2.f32 %v563_v62  ;;  %v1588_v46 = vpop.eup %1587  ;;  %v687_v22 = vmul.f32 1.442695, %v651_v14  ;;  %v653_v5 = vmul.f32 %v2670_v26, %v595_v23  ;;  %v599_v31 = vmul.f32 0.6931472, %v1582_v28 }
  0xe5   :  { %1607 = vlog2.f32 %v578_v21  ;;  %v1590_v10 = vpop.eup %1589  ;;  %v689_v43 = vmul.f32 1.442695, %v652_v2  ;;  %v654_v15 = vmul.f32 %v2670_v26, %v597_v12  ;;  %v601_v35 = vmul.f32 0.6931472, %v1584_v42 }
  0xe6   :  { %1609 = vlog2.f32 %v579_v4  ;;  %v1592_v58 = vpop.eup %1591  ;;  %v666_v19 = vmul.f32 %v2670_v26, %v2377_v16  ;;  %v711_v39 = vmul.f32 1.442695, %v663_v38  ;;  %v713_v40 = vmul.f32 1.442695, %v664_v34 }
  0xe7   :  { %1611 = vpow2.f32 %v679_v56  ;;  %v1594_v48 = vpop.eup %1593  ;;  %v667_v49 = vmul.f32 %v2670_v26, %v623_v9  ;;  %v668_v63 = vmul.f32 %v2670_v26, %v625_v7  ;;  %v627_v3 = vmul.f32 0.6931472, %v1572_v25 }
  0xe8   :  { %1613 = vpow2.f32 %v681_v30  ;;  %v2416_v11 = vpop.eup %1595  ;;  %v691_v13 = vmul.f32 1.442695, %v653_v5  ;;  %v603_v55 = vmul.f32 0.6931472, %v1576_v20  ;;  %v655_v0 = vmul.f32 %v2670_v26, %v599_v31 }
  0xe9   :  { %1615 = vpow2.f32 %v687_v22  ;;  %v2419_v1 = vpop.eup %1597  ;;  %v693_v16 = vmul.f32 1.442695, %v654_v15  ;;  %v605_v53 = vmul.f32 0.6931472, %v1578_v45  ;;  %v656_v17 = vmul.f32 %v2670_v26, %v601_v35 }
  0xea   :  { %1617 = vpow2.f32 %v689_v43  ;;  %v1600_v54 = vpop.eup %1599  ;;  %v715_v41 = vmul.f32 1.442695, %v2381_v61  ;;  %v717_v24 = vmul.f32 1.442695, %v666_v19  ;;  %v629_v6 = vmul.f32 0.6931472, %v2394_v18 }
  0xeb   :  { %1619 = vpow2.f32 %v711_v39  ;;  %v1602_v52 = vpop.eup %1601  ;;  %v719_v27 = vmul.f32 1.442695, %v667_v49  ;;  %v721_v25 = vmul.f32 1.442695, %v668_v63  ;;  %v669_v47 = vmul.f32 %v2670_v26, %v627_v3 }
  0xec   :  { %1621 = vpow2.f32 %v713_v40  ;;  %v657_v36 = vmul.f32 %v2670_v26, %v603_v55  ;;  %v695_v51 = vmul.f32 1.442695, %v655_v0  ;;  %v746_v57 = vadd.f32 %v1602_v52, %v1600_v54 }
  0xed   :  { %v1604_v33 = vpop.eup %1603  ;;  %1623 = vpow2.f32 %v691_v13  ;;  %v658_v20 = vmul.f32 %v2670_v26, %v605_v53  ;;  %v697_v61 = vmul.f32 1.442695, %v656_v17  ;;  %v670_v14 = vmul.f32 %v2670_v26, %v629_v6 }
  0xee   :  { %v1606_v8 = vpop.eup %1605  ;;  %v607_v29 = vmul.f32 0.6931472, %v1604_v33  ;;  %1625 = vpow2.f32 %v693_v16  ;;  %v631_v59 = vmul.f32 0.6931472, %v1588_v46  ;;  %747 = vadd.xlane.f32.xlu1 %v746_v57  ;;  %v723_v32 = vmul.f32 1.442695, %v669_v47 }
  0xef   :  { %v1608_v18 = vpop.eup %1607  ;;  %v609_v45 = vmul.f32 0.6931472, %v1606_v8  ;;  %1627 = vpow2.f32 %v715_v41  ;;  %v633_v60 = vmul.f32 0.6931472, %v1590_v10  ;;  %v611_v23 = vmul.f32 0.6931472, %v1592_v58 }
  0xf0   :  { %v1610_v2 = vpop.eup %1609  ;;  %1629 = vpow2.f32 %v717_v24  ;;  %v635_v62 = vmul.f32 0.6931472, %v2403_v44  ;;  %v699_v28 = vmul.f32 1.442695, %v657_v36  ;;  %v659_v12 = vmul.f32 %v2670_v26, %v607_v29 }
  0xf1   :  { %v1612_v50 = vpop.eup %1611  ;;  %1631 = vpow2.f32 %v695_v51  ;;  %v701_v4 = vmul.f32 1.442695, %v658_v20  ;;  %v613_v42 = vmul.f32 0.6931472, %v1594_v48  ;;  %v660_v38 = vmul.f32 %v2670_v26, %v609_v45 }
  0xf2   :  { %v1614_v21 = vpop.eup %1613  ;;  %1633 = vpow2.f32 %v697_v61  ;;  %v725_v56 = vmul.f32 1.442695, %v670_v14  ;;  %v671_v30 = vmul.f32 %v2670_v26, %v631_v59  ;;  %v637_v46 = vmul.f32 0.6931472, %v2408_v37 }
  0xf3   :  { %v1616_v34 = vpop.eup %1615  ;;  %v743_v9 = vadd.f32 %v1614_v21, %v1612_v50  ;;  %1635 = vpow2.f32 %v719_v27  ;;  %v672_v44 = vmul.f32 %v2670_v26, %v633_v60  ;;  %v661_v22 = vmul.f32 %v2670_v26, %v611_v23 }
  0xf4   :  { %v1618_v7 = vpop.eup %1617  ;;  %1637 = vpow2.f32 %v721_v25  ;;  %v639_v31 = vmul.f32 0.6931472, %v1608_v18  ;;  %v703_v10 = vmul.f32 1.442695, %v659_v12  ;;  %v662_v35 = vmul.f32 %v2670_v26, %v613_v42 }
  0xf5   :  { %v1620_v5 = vpop.eup %1619  ;;  %744 = vadd.xlane.f32.xlu0 %v743_v9  ;;  %v749_v43 = vadd.f32 %v1618_v7, %v1616_v34  ;;  %1639 = vpow2.f32 %v699_v28  ;;  %v641_v58 = vmul.f32 0.6931472, %v1610_v2  ;;  %v705_v19 = vmul.f32 1.442695, %v660_v38 }
  0xf6   :  { %v1622_v15 = vpop.eup %1621  ;;  %1641 = vpow2.f32 %v701_v4  ;;  %v673_v37 = vmul.f32 %v2670_v26, %v635_v62  ;;  %v727_v40 = vmul.f32 1.442695, %v671_v30  ;;  %v674_v63 = vmul.f32 %v2670_v26, %v637_v46 }
  0xf7   :  { %v1624_v39 = vpop.eup %1623  ;;  %750 = vadd.xlane.f32.xlu1 %v749_v43  ;;  %v767_v48 = vadd.f32 %v1622_v15, %v1620_v5  ;;  %1643 = vpow2.f32 %v723_v32  ;;  %v729_v3 = vmul.f32 1.442695, %v672_v44  ;;  %v643_v13 = vmul.f32 0.6931472, %v2416_v11  ;;  %v1004_v5 = vld [vmem:[%s2651_s5 + $0x8] sm:$0xff]  ;;  %v1006_v15 = vld [vmem:[%s2651_s5 + $0x18] sm:$0xff] }
  0xf8   :  { %v1626_v49 = vpop.eup %1625  ;;  %1645 = vpow2.f32 %v725_v56  ;;  %v707_v0 = vmul.f32 1.442695, %v661_v22  ;;  %v675_v16 = vmul.f32 %v2670_v26, %v639_v31  ;;  %v645_v54 = vmul.f32 0.6931472, %v2419_v1  ;;  %v1003_v22 = vld [vmem:[%s2651_s5] sm:$0xff]  ;;  %v1005_v31 = vld [vmem:[%s2651_s5 + $0x10] sm:$0xff] }
  0xf9   :  { %v1628_v55 = vpop.eup %1627  ;;  %768 = vadd.xlane.f32.xlu0 %v767_v48  ;;  %v752_v53 = vadd.f32 %v1626_v49, %v1624_v39  ;;  %1647 = vpow2.f32 %v703_v10  ;;  %v709_v41 = vmul.f32 1.442695, %v662_v35  ;;  %v676_v24 = vmul.f32 %v2670_v26, %v641_v58  ;;  %v1008_v39 = vld [vmem:[%s2651_s5 + $0x28] sm:$0xff] }
  0xfa   :  { %v1630_v17 = vpop.eup %1629  ;;  %1649 = vpow2.f32 %v705_v19  ;;  %v731_v52 = vmul.f32 1.442695, %v673_v37  ;;  %v733_v25 = vmul.f32 1.442695, %v674_v63  ;;  %v677_v33 = vmul.f32 %v2670_v26, %v643_v13  ;;  %v1007_v19 = vld [vmem:[%s2651_s5 + $0x20] sm:$0xff]  ;;  %v1009_v63 = vld [vmem:[%s2651_s5 + $0x30] sm:$0xff] }
  0xfb   :  { %v1632_v6 = vpop.eup %1631  ;;  %753 = vadd.xlane.f32.xlu1 %v752_v53  ;;  %v770_v27 = vadd.f32 %v1630_v17, %v1628_v55  ;;  %1651 = vpow2.f32 %v727_v40  ;;  %v735_v36 = vmul.f32 1.442695, %v675_v16  ;;  %v678_v57 = vmul.f32 %v2670_v26, %v645_v54 }
  0xfc   :  { %v1634_v11 = vpop.eup %1633  ;;  %1653 = vpow2.f32 %v729_v3  ;;  %v737_v8 = vmul.f32 1.442695, %v676_v24  ;;  %v739_v14 = vmul.f32 1.442695, %v677_v33  ;;  %v1879_v10 = vmov 0.0|0.0   ;;  %v1010_v3 = vld [vmem:[%s2651_s5 + $0x38] sm:$0xff]  ;;  %s1531_s5 = spop %1530 }
  0xfd   :  { %v1636_v47 = vpop.eup %1635  ;;  %771 = vadd.xlane.f32.xlu0 %v770_v27  ;;  %v755_v51 = vadd.f32 %v1634_v11, %v1632_v6  ;;  %1655 = vpow2.f32 %v707_v0  ;;  %v741_v2 = vmul.f32 1.442695, %v678_v57  ;;  %1512 = vmatprep.subr.bf16.mxu0 %v1879_v10  ;;  %v1513_v43 = vpack.c.bf16 %v1004_v5, %v1003_v22 }
  0xfe   :  { %v1638_v1 = vpop.eup %1637  ;;  %1657 = vpow2.f32 %v709_v41  ;;  %v1881_v35 = vmov 0.0   ;;  %1524 = vmatprep.subr.bf16.mxu1 %v1879_v10  ;;  %v1516_v58 = vpack.c.bf16 %v1006_v15, %v1005_v31  ;;  %v2671_v37 = vlaneseq }
  0xff   :  { %v1640_v20 = vpop.eup %1639  ;;  %756 = vadd.xlane.f32.xlu1 %v755_v51  ;;  %v773_v61 = vadd.f32 %v1638_v1, %v1636_v47  ;;  %1659 = vpow2.f32 %v731_v52  ;;  %1498 = vmatprep.mubr.msk.f32.mxu0 %vm1880_vm0, %v1881_v35  ;;  %v1519_v48 = vpack.c.bf16 %v1008_v39, %v1007_v19  ;;  %v1383_v49 = vstv %s1382_s16 }
 0x100   :  { %v1642_v29 = vpop.eup %1641  ;;  %1661 = vpow2.f32 %v733_v25  ;;  %1509 = vmatprep.mubr.msk.f32.mxu1 %vm1880_vm0, %v1881_v35  ;;  %1514 = vmatpush3.bf16.msra.mxu0 %v1513_v43  ;;  %v2466_v40 = vand.u32 127, %v2671_v37  ;;  %v1388_v13 = vstv %s1466_s17  ;;  %v1522_v16 = vpack.c.bf16 %v1010_v3, %v1009_v63 }
 0x101   :  { %v1644_v18 = vpop.eup %1643  ;;  %774 = vadd.xlane.f32.xlu0 %v773_v61  ;;  %v758_v59 = vadd.f32 %v1642_v29, %v1640_v20  ;;  %1663 = vpow2.f32 %v735_v36  ;;  %1515 = vmatprep.subr.bf16.mxu0 %v1879_v10  ;;  %v2480_v36 = vstv %s1531_s5 }
 0x102   :  { %v1646_v45 = vpop.eup %1645  ;;  %1665 = vpow2.f32 %v737_v8  ;;  %vm1384_vm1 = vcmp.eq.s32.totalorder %v2466_v40, %v1383_v49  ;;  %vm1389_vm3 = vcmp.eq.s32.totalorder %v2466_v40, %v1388_v13 }
 0x103   :  { %v1648_v32 = vpop.eup %1647  ;;  %759 = vadd.xlane.f32.xlu1 %v758_v59  ;;  %v776_v60 = vadd.f32 %v1646_v45, %v1644_v18  ;;  %1667 = vpow2.f32 %v739_v14  ;;  %v1465_v55 = vsel %vm1384_vm1, 1.0, %v1881_v35  ;;  %v1467_v0 = vsel %vm1389_vm3, 1.0, %v1881_v35 }
 0x104   :  { %v1650_v26 = vpop.eup %1649  ;;  %1669 = vpow2.f32 %v741_v2  ;;  %1517 = vmatpush3.bf16.msra.mxu0 %v1516_v58  ;;  %v2477_v53 = vsel %vm1392_vm2, %v1465_v55, %v1467_v0  ;;  %vm1291_vm3 = vcmask 261120  }
 0x105   :  { %v1652_v23 = vpop.eup %1651  ;;  %777 = vadd.xlane.f32.xlu0 %v776_v60  ;;  %v761_v50 = vadd.f32 %v1650_v26, %v1648_v32  ;;  %1518 = vmatprep.subr.bf16.mxu0 %v1879_v10 }
 0x106   :  { %v1654_v62 = vpop.eup %1653 }
 0x107   :  { %v1656_v28 = vpop.eup %1655  ;;  %762 = vadd.xlane.f32.xlu1 %v761_v50  ;;  %v779_v12 = vadd.f32 %v1654_v62, %v1652_v23 }
 0x108   :  { %v1658_v21 = vpop.eup %1657  ;;  %1520 = vmatpush3.bf16.msra.mxu0 %v1519_v48 }
 0x109   :  { %v1660_v4 = vpop.eup %1659  ;;  %780 = vadd.xlane.f32.xlu0 %v779_v12  ;;  %v764_v42 = vadd.f32 %v1658_v21, %v1656_v28  ;;  %1521 = vmatprep.subr.bf16.mxu0 %v1879_v10 }
 0x10a   :  { %v1662_v38 = vpop.eup %1661 }
 0x10b   :  { %v1664_v34 = vpop.eup %1663  ;;  %765 = vadd.xlane.f32.xlu1 %v764_v42  ;;  %v782_v56 = vadd.f32 %v1662_v38, %v1660_v4 }
 0x10c   :  { %v1666_v30 = vpop.eup %1665  ;;  %1523 = vmatpush3.bf16.msra.mxu0 %v1522_v16 }
 0x10d   :  { %783 = vadd.xlane.f32.xlu0 %v782_v56  ;;  %v1668_v9 = vpop.eup %1667  ;;  %v785_v7 = vadd.f32 %v1666_v30, %v1664_v34 }
 0x10e   :  { %v1670_v46 = vpop.eup %1669 }
 0x10f   :  { %v788_v44 = vadd.f32 %v1670_v46, %v1668_v9 }
 0x111   :  { %786 = vadd.xlane.f32.xlu0 %v785_v7 }
 0x115   :  { %789 = vadd.xlane.f32.xlu0 %v788_v44 }
 0x17b   :  { %v748_v17 = vpop.xlane.xlu1 %747 }
 0x17c   :  { %v792_v54 = vmul.f32 0.00390625, %v748_v17 }
 0x17e   :  { %1671 = vlog2.f32 %v792_v54 }
 0x182   :  { %v745_v41 = vpop.xlane.xlu0 %744 }
 0x183   :  { %v791_v24 = vmul.f32 0.00390625, %v745_v41 }
 0x184   :  { %v751_v6 = vpop.xlane.xlu1 %750 }
 0x185   :  { %1673 = vlog2.f32 %v791_v24  ;;  %v793_v52 = vmul.f32 0.00390625, %v751_v6 }
 0x186   :  { %v769_v27 = vpop.xlane.xlu0 %768 }
 0x187   :  { %1675 = vlog2.f32 %v793_v52  ;;  %v799_v11 = vmul.f32 0.00390625, %v769_v27 }
 0x188   :  { %v754_v25 = vpop.xlane.xlu1 %753  ;;  %v1672_v47 = vpop.eup %1671 }
 0x189   :  { %1677 = vlog2.f32 %v799_v11  ;;  %v794_v33 = vmul.f32 0.00390625, %v754_v25  ;;  %v810_v51 = vmul.f32 0.6931472, %v1672_v47 }
 0x18a   :  { %v772_v1 = vpop.xlane.xlu0 %771 }
 0x18b   :  { %1679 = vlog2.f32 %v794_v33  ;;  %v800_v57 = vmul.f32 0.00390625, %v772_v1  ;;  %v844_v20 = vmul.f32 %v2480_v36, %v810_v51 }
 0x18c   :  { %v757_v8 = vpop.xlane.xlu1 %756 }
 0x18d   :  { %1681 = vlog2.f32 %v800_v57  ;;  %v795_v61 = vmul.f32 0.00390625, %v757_v8  ;;  %v861_v2 = vmul.f32 1.442695, %v844_v20 }
 0x18e   :  { %v775_v29 = vpop.xlane.xlu0 %774 }
 0x18f   :  { %v1674_v18 = vpop.eup %1673  ;;  %1683 = vlog2.f32 %v795_v61  ;;  %v801_v14 = vmul.f32 0.00390625, %v775_v29 }
 0x190   :  { %v808_v59 = vmul.f32 0.6931472, %v1674_v18  ;;  %v760_v45 = vpop.xlane.xlu1 %759 }
 0x191   :  { %v1676_v32 = vpop.eup %1675  ;;  %1685 = vlog2.f32 %v801_v14  ;;  %v796_v60 = vmul.f32 0.00390625, %v760_v45 }
 0x192   :  { %v812_v26 = vmul.f32 0.6931472, %v1676_v32  ;;  %v778_v23 = vpop.xlane.xlu0 %777  ;;  %v843_v50 = vmul.f32 %v2480_v36, %v808_v59 }
 0x193   :  { %v1678_v62 = vpop.eup %1677  ;;  %1687 = vlog2.f32 %v796_v60  ;;  %v802_v28 = vmul.f32 0.00390625, %v778_v23 }
 0x194   :  { %v824_v12 = vmul.f32 0.6931472, %v1678_v62  ;;  %v763_v21 = vpop.xlane.xlu1 %762  ;;  %v845_v4 = vmul.f32 %v2480_v36, %v812_v26  ;;  %v859_v42 = vmul.f32 1.442695, %v843_v50  ;;  %1689 = vpow2.f32 %v861_v2 }
 0x195   :  { %v1680_v38 = vpop.eup %1679  ;;  %1691 = vlog2.f32 %v802_v28  ;;  %v797_v34 = vmul.f32 0.00390625, %v763_v21 }
 0x196   :  { %v814_v56 = vmul.f32 0.6931472, %v1680_v38  ;;  %v781_v30 = vpop.xlane.xlu0 %780  ;;  %v851_v9 = vmul.f32 %v2480_v36, %v824_v12  ;;  %1693 = vpow2.f32 %v859_v42  ;;  %v863_v7 = vmul.f32 1.442695, %v845_v4 }
 0x197   :  { %v1682_v46 = vpop.eup %1681  ;;  %1695 = vlog2.f32 %v797_v34  ;;  %v803_v44 = vmul.f32 0.00390625, %v781_v30 }
 0x198   :  { %v826_v22 = vmul.f32 0.6931472, %v1682_v46  ;;  %v766_v5 = vpop.xlane.xlu1 %765  ;;  %v846_v31 = vmul.f32 %v2480_v36, %v814_v56  ;;  %1697 = vpow2.f32 %v863_v7  ;;  %v875_v43 = vmul.f32 1.442695, %v851_v9 }
 0x199   :  { %v1684_v15 = vpop.eup %1683  ;;  %1699 = vlog2.f32 %v803_v44  ;;  %v798_v35 = vmul.f32 0.00390625, %v766_v5 }
 0x19a   :  { %v816_v58 = vmul.f32 0.6931472, %v1684_v15  ;;  %v784_v19 = vpop.xlane.xlu0 %783  ;;  %v852_v39 = vmul.f32 %v2480_v36, %v826_v22  ;;  %v865_v37 = vmul.f32 1.442695, %v846_v31  ;;  %1701 = vpow2.f32 %v875_v43 }
 0x19b   :  { %v1686_v48 = vpop.eup %1685  ;;  %1703 = vlog2.f32 %v798_v35  ;;  %v804_v49 = vmul.f32 0.00390625, %v784_v19 }
 0x19c   :  { %v828_v63 = vmul.f32 0.6931472, %v1686_v48  ;;  %v847_v3 = vmul.f32 %v2480_v36, %v816_v58  ;;  %1705 = vpow2.f32 %v865_v37  ;;  %v877_v13 = vmul.f32 1.442695, %v852_v39 }
 0x19d   :  { %v1688_v55 = vpop.eup %1687  ;;  %1707 = vlog2.f32 %v804_v49 }
 0x19e   :  { %v2489_v0 = vpop.eup %1689  ;;  %v818_v16 = vmul.f32 0.6931472, %v1688_v55  ;;  %v787_v17 = vpop.xlane.xlu0 %786  ;;  %v853_v54 = vmul.f32 %v2480_v36, %v828_v63  ;;  %v867_v41 = vmul.f32 1.442695, %v847_v3  ;;  %1709 = vpow2.f32 %v877_v13 }
 0x19f   :  { %v1692_v24 = vpop.eup %1691  ;;  %v805_v6 = vmul.f32 0.00390625, %v787_v17  ;;  %v892_v33 = vsub.f32 0.0, %v2489_v0 }
 0x1a0   :  { %v2492_v52 = vpop.eup %1693  ;;  %v848_v27 = vmul.f32 %v2480_v36, %v818_v16  ;;  %v830_v11 = vmul.f32 0.6931472, %v1692_v24  ;;  %1711 = vpow2.f32 %v867_v41  ;;  %v879_v25 = vmul.f32 1.442695, %v853_v54 }
 0x1a1   :  { %v1696_v47 = vpop.eup %1695  ;;  %1713 = vlog2.f32 %v805_v6  ;;  %v891_v18 = vsub.f32 0.0, %v2492_v52  ;;  %v909_v26 = vmul.f32 1.442695, %v892_v33 }
 0x1a2   :  { %v2496_v51 = vpop.eup %1697  ;;  %v869_v1 = vmul.f32 1.442695, %v848_v27  ;;  %v854_v57 = vmul.f32 %v2480_v36, %v830_v11  ;;  %v820_v8 = vmul.f32 0.6931472, %v1696_v47  ;;  %v790_v20 = vpop.xlane.xlu0 %789  ;;  %1715 = vpow2.f32 %v879_v25 }
 0x1a3   :  { %v1700_v61 = vpop.eup %1699  ;;  %v806_v29 = vmul.f32 0.00390625, %v790_v20  ;;  %v893_v60 = vsub.f32 0.0, %v2496_v51  ;;  %v907_v42 = vmul.f32 1.442695, %v891_v18 }
 0x1a4   :  { %v2500_v14 = vpop.eup %1701  ;;  %1717 = vpow2.f32 %v869_v1  ;;  %v881_v59 = vmul.f32 1.442695, %v854_v57  ;;  %v849_v45 = vmul.f32 %v2480_v36, %v820_v8  ;;  %v832_v2 = vmul.f32 0.6931472, %v1700_v61 }
 0x1a5   :  { %v1704_v32 = vpop.eup %1703  ;;  %1719 = vlog2.f32 %v806_v29  ;;  %v899_v4 = vsub.f32 0.0, %v2500_v14  ;;  %v911_v9 = vmul.f32 1.442695, %v893_v60 }
 0x1a6   :  { %v2504_v23 = vpop.eup %1705  ;;  %1721 = vpow2.f32 %v881_v59  ;;  %v871_v50 = vmul.f32 1.442695, %v849_v45  ;;  %v855_v62 = vmul.f32 %v2480_v36, %v832_v2  ;;  %v822_v28 = vmul.f32 0.6931472, %v1704_v32 }
 0x1a7   :  { %v1708_v12 = vpop.eup %1707  ;;  %v894_v21 = vsub.f32 0.0, %v2504_v23  ;;  %v923_v43 = vmul.f32 1.442695, %v899_v4 }
 0x1a8   :  { %1723 = vpow2.f32 %v871_v50  ;;  %v883_v38 = vmul.f32 1.442695, %v855_v62  ;;  %v850_v34 = vmul.f32 %v2480_v36, %v822_v28  ;;  %v834_v56 = vmul.f32 0.6931472, %v1708_v12  ;;  %v2510_v30 = vpop.eup %1709 }
 0x1a9   :  { %1725 = vpow2.f32 %v909_v26  ;;  %v913_v31 = vmul.f32 1.442695, %v894_v21  ;;  %v900_v19 = vsub.f32 0.0, %v2510_v30 }
 0x1aa   :  { %v2512_v7 = vpop.eup %1711  ;;  %1727 = vpow2.f32 %v883_v38  ;;  %v873_v46 = vmul.f32 1.442695, %v850_v34  ;;  %v856_v44 = vmul.f32 %v2480_v36, %v834_v56 }
 0x1ab   :  { %v1714_v22 = vpop.eup %1713  ;;  %v895_v5 = vsub.f32 0.0, %v2512_v7  ;;  %1729 = vpow2.f32 %v907_v42  ;;  %v925_v17 = vmul.f32 1.442695, %v900_v19 }
 0x1ac   :  { %v2516_v15 = vpop.eup %1715  ;;  %1731 = vpow2.f32 %v873_v46  ;;  %v885_v35 = vmul.f32 1.442695, %v856_v44  ;;  %v836_v58 = vmul.f32 0.6931472, %v1714_v22 }
 0x1ad   :  { %v901_v39 = vsub.f32 0.0, %v2516_v15  ;;  %1733 = vpow2.f32 %v911_v9  ;;  %v915_v37 = vmul.f32 1.442695, %v895_v5 }
 0x1ae   :  { %v2520_v48 = vpop.eup %1717  ;;  %1735 = vpow2.f32 %v885_v35  ;;  %v857_v49 = vmul.f32 %v2480_v36, %v836_v58 }
 0x1af   :  { %v1720_v63 = vpop.eup %1719  ;;  %v896_v3 = vsub.f32 0.0, %v2520_v48  ;;  %1737 = vpow2.f32 %v913_v31  ;;  %v927_v24 = vmul.f32 1.442695, %v901_v39 }
 0x1b0   :  { %v2524_v13 = vpop.eup %1721  ;;  %v887_v55 = vmul.f32 1.442695, %v857_v49  ;;  %v838_v16 = vmul.f32 0.6931472, %v1720_v63  ;;  %1739 = vpow2.f32 %v923_v43 }
 0x1b1   :  { %v917_v54 = vmul.f32 1.442695, %v896_v3  ;;  %v902_v41 = vsub.f32 0.0, %v2524_v13  ;;  %1741 = vpow2.f32 %v915_v37 }
 0x1b2   :  { %v2527_v6 = vpop.eup %1723  ;;  %1743 = vpow2.f32 %v887_v55  ;;  %v858_v27 = vmul.f32 %v2480_v36, %v838_v16 }
 0x1b3   :  { %v1726_v11 = vpop.eup %1725  ;;  %1745 = vpow2.f32 %v917_v54  ;;  %v929_v25 = vmul.f32 1.442695, %v902_v41  ;;  %v897_v47 = vsub.f32 0.0, %v2527_v6 }
 0x1b4   :  { %v2531_v33 = vpop.eup %1727  ;;  %v889_v1 = vmul.f32 1.442695, %v858_v27  ;;  %1747 = vpow2.f32 %v925_v17  ;;  %v940_v50 = vadd.f32 1.0, %v1726_v11 }
 0x1b5   :  { %v1730_v57 = vpop.eup %1729  ;;  %v903_v8 = vsub.f32 0.0, %v2531_v33  ;;  %1749 = vpow2.f32 %v927_v24  ;;  %v919_v61 = vmul.f32 1.442695, %v897_v47 }
 0x1b6   :  { %v2534_v20 = vpop.eup %1731  ;;  %1751 = vpow2.f32 %v889_v1  ;;  %v939_v45 = vadd.f32 1.0, %v1730_v57  ;;  %v1040_v57 = vadd.s32 4294967288, %v2466_v40 }
 0x1b7   :  { %v1734_v29 = vpop.eup %1733  ;;  %1753 = vpow2.f32 %v929_v25  ;;  %v931_v36 = vmul.f32 1.442695, %v903_v8  ;;  %v898_v18 = vsub.f32 0.0, %v2534_v20 }
 0x1b8   :  { %v2537_v59 = vpop.eup %1735  ;;  %v941_v12 = vadd.f32 1.0, %v1734_v29 }
 0x1b9   :  { %v1738_v2 = vpop.eup %1737  ;;  %1755 = vpow2.f32 %v931_v36  ;;  %v921_v32 = vmul.f32 1.442695, %v898_v18  ;;  %v904_v60 = vsub.f32 0.0, %v2537_v59  ;;  %v1054_v36 = vadd.s32 4294967272, %v2466_v40 }
 0x1ba   :  { %v1740_v26 = vpop.eup %1739  ;;  %1757 = vpow2.f32 %v919_v61  ;;  %v942_v4 = vadd.f32 1.0, %v1738_v2  ;;  %v1047_v61 = vadd.s32 4294967280, %v2466_v40 }
 0x1bb   :  { %v1742_v62 = vpop.eup %1741  ;;  %1759 = vpow2.f32 %v921_v32  ;;  %v933_v28 = vmul.f32 1.442695, %v904_v60  ;;  %v947_v44 = vadd.f32 1.0, %v1740_v26  ;;  %v2672_v60 = vld [vmem:[#allocation12_spill] sm:$0xff] }
 0x1bc   :  { %v2540_v21 = vpop.eup %1743  ;;  %1761 = vrcp.f32 %v939_v45  ;;  %v943_v56 = vadd.f32 1.0, %v1742_v62  ;;  %v1061_v45 = vadd.s32 4294967264, %v2466_v40  ;;  %v1038_v26 = vsub.s32 %v2466_v40, %v2672_v60 }
 0x1bd   :  { %v1746_v42 = vpop.eup %1745  ;;  %1763 = vpow2.f32 %v933_v28  ;;  %v905_v38 = vsub.f32 0.0, %v2540_v21  ;;  %v1050_v28 = vsub.s32 %v1047_v61, %v2672_v60 }
 0x1be   :  { %v1748_v34 = vpop.eup %1747  ;;  %1765 = vrcp.f32 %v940_v50  ;;  %v944_v5 = vadd.f32 1.0, %v1746_v42  ;;  %v1043_v50 = vsub.s32 %v1040_v57, %v2672_v60 }
 0x1bf   :  { %v1750_v9 = vpop.eup %1749  ;;  %v935_v46 = vmul.f32 1.442695, %v905_v38  ;;  %1767 = vrcp.f32 %v941_v12  ;;  %v948_v35 = vadd.f32 1.0, %v1748_v34  ;;  %v1068_v12 = vadd.s32 4294967256, %v2466_v40 }
 0x1c0   :  { %v2543_v22 = vpop.eup %1751  ;;  %1769 = vrcp.f32 %v942_v4  ;;  %v949_v39 = vadd.f32 1.0, %v1750_v9  ;;  %v1075_v4 = vadd.s32 4294967248, %v2466_v40  ;;  %v1057_v34 = vsub.s32 %v1054_v36, %v2672_v60 }
 0x1c1   :  { %v1754_v31 = vpop.eup %1753  ;;  %1771 = vpow2.f32 %v935_v46  ;;  %v906_v43 = vsub.f32 0.0, %v2543_v22 }
 0x1c2   :  { %1773 = vrcp.f32 %v943_v56  ;;  %v950_v49 = vadd.f32 1.0, %v1754_v31  ;;  %v1082_v56 = vadd.s32 4294967240, %v2466_v40 }
 0x1c3   :  { %v1756_v58 = vpop.eup %1755  ;;  %v937_v19 = vmul.f32 1.442695, %v906_v43  ;;  %1775 = vrcp.f32 %v947_v44 }
 0x1c4   :  { %v1758_v37 = vpop.eup %1757  ;;  %1777 = vrcp.f32 %v944_v5  ;;  %v951_v3 = vadd.f32 1.0, %v1756_v58  ;;  %v1064_v5 = vsub.s32 %v1061_v45, %v2672_v60 }
 0x1c5   :  { %v1760_v63 = vpop.eup %1759  ;;  %1779 = vpow2.f32 %v937_v19  ;;  %v945_v17 = vadd.f32 1.0, %v1758_v37 }
 0x1c6   :  { %v1762_v55 = vpop.eup %1761  ;;  %1781 = vrcp.f32 %v948_v35  ;;  %v946_v41 = vadd.f32 1.0, %v1760_v63 }
 0x1c7   :  { %v1764_v16 = vpop.eup %1763  ;;  %1783 = vrcp.f32 %v949_v39  ;;  %v987_v38 = vmul.f32 %v1762_v55, %v2492_v52 }
 0x1c8   :  { %v1766_v54 = vpop.eup %1765  ;;  %1785 = vrcp.f32 %v950_v49  ;;  %v952_v24 = vadd.f32 1.0, %v1764_v16 }
 0x1c9   :  { %v1768_v27 = vpop.eup %1767  ;;  %1787 = vrcp.f32 %v951_v3  ;;  %v988_v46 = vmul.f32 %v1766_v54, %v2489_v0  ;;  %v1071_v0 = vsub.s32 %v1068_v12, %v2672_v60  ;;  %v1459_v12 = vld [vmem:[%s2652_s6] ss:$0 sm:$0xff] }
 0x1ca   :  { %v1770_v11 = vpop.eup %1769  ;;  %1789 = vrcp.f32 %v952_v24  ;;  %v989_v43 = vmul.f32 %v1768_v27, %v2496_v51  ;;  %v1039_v51 = vrot.slane %v987_v38, %v1038_v26 }
 0x1cb   :  { %v1772_v25 = vpop.eup %1771  ;;  %1791 = vrcp.f32 %v945_v17  ;;  %v990_v35 = vmul.f32 %v1770_v11, %v2504_v23  ;;  %v1085_v23 = vsub.s32 %v1082_v56, %v2672_v60  ;;  %v1044_v3 = vrot.slane %v988_v46, %v1043_v50 }
 0x1cc   :  { %v1774_v47 = vpop.eup %1773  ;;  %1793 = vrcp.f32 %v946_v41  ;;  %v953_v1 = vadd.f32 1.0, %v1772_v25  ;;  %v1051_v16 = vrot.slane %v989_v43, %v1050_v28 }
 0x1cd   :  { %v1776_v8 = vpop.eup %1775  ;;  %v991_v49 = vmul.f32 %v1774_v47, %v2512_v7  ;;  %v1058_v17 = vrot.slane %v990_v35, %v1057_v34 }
 0x1ce   :  { %v1778_v29 = vpop.eup %1777  ;;  %1795 = vrcp.f32 %v953_v1  ;;  %v995_v40 = vmul.f32 %v1776_v8, %v2500_v14 }
 0x1cf   :  { %v1780_v18 = vpop.eup %1779  ;;  %v1065_v27 = vrot.slane %v991_v49, %v1064_v5 }
 0x1d0   :  { %v1782_v2 = vpop.eup %1781  ;;  %v954_v32 = vadd.f32 1.0, %v1780_v18  ;;  %v1092_v7 = vrot.slane %v995_v40, %v1038_v26 }
 0x1d1   :  { %v1784_v62 = vpop.eup %1783  ;;  %v996_v44 = vmul.f32 %v1782_v2, %v2510_v30  ;;  %v1078_v30 = vsub.s32 %v1075_v4, %v2672_v60 }
 0x1d2   :  { %v1786_v42 = vpop.eup %1785  ;;  %1797 = vrcp.f32 %v954_v32  ;;  %v997_v58 = vmul.f32 %v1784_v62, %v2516_v15  ;;  %v992_v15 = vmul.f32 %v1778_v29, %v2520_v48 }
 0x1d3   :  { %v1788_v9 = vpop.eup %1787  ;;  %v998_v19 = vmul.f32 %v1786_v42, %v2524_v13  ;;  %v1096_v13 = vrot.slane %v996_v44, %v1043_v50 }
 0x1d4   :  { %v1790_v31 = vpop.eup %1789  ;;  %v999_v37 = vmul.f32 %v1788_v9, %v2531_v33  ;;  %v1101_v54 = vrot.slane %v997_v58, %v1050_v28  ;;  %v1072_v11 = vrot.slane %v992_v15, %v1071_v0  ;;  %v1461_v15 = vld [vmem:[%s2653_s7] ss:$0 sm:$0xff] }
 0x1d5   :  { %v1792_v52 = vpop.eup %1791  ;;  %v1000_v63 = vmul.f32 %v1790_v31, %v2537_v59  ;;  %v1106_v24 = vrot.slane %v998_v19, %v1057_v34  ;;  %v1046_v59 = vsel %vm1045_vm4, %v1044_v3, %v1039_v51  ;;  %v1097_v25 = vsel %vm1045_vm4, %v1096_v13, %v1092_v7  ;;  %v1462_v3 = vld [vmem:[%s2654_s8] ss:$0 sm:$0xff] }
 0x1d6   :  { %v1794_v39 = vpop.eup %1793  ;;  %v993_v14 = vmul.f32 %v1792_v52, %v2527_v6  ;;  %v1111_v48 = vrot.slane %v999_v37, %v1064_v5  ;;  %v1053_v1 = vsel %vm1052_vm5, %v1051_v16, %v1046_v59  ;;  %v1257_v16 = vld [vmem:[%s2655_s9 + $0x8] sm:$0xff]  ;;  %v1259_v59 = vld [vmem:[%s2655_s9 + $0x18] sm:$0xff] }
 0x1d7   :  { %v994_v41 = vmul.f32 %v1794_v39, %v2534_v20  ;;  %v1116_v47 = vrot.slane %v1000_v63, %v1071_v0  ;;  %v1102_v20 = vsel %vm1052_vm5, %v1101_v54, %v1097_v25  ;;  %v1060_v61 = vsel %vm1059_vm6, %v1058_v17, %v1053_v1 }
 0x1d8   :  { %v1796_v55 = vpop.eup %1795  ;;  %v1079_v57 = vrot.slane %v993_v14, %v1078_v30  ;;  %v1107_v36 = vsel %vm1059_vm6, %v1106_v24, %v1102_v20  ;;  %v1067_v18 = vsel %vm1066_vm7, %v1065_v27, %v1060_v61  ;;  %v1256_v14 = vld [vmem:[%s2655_s9] sm:$0xff]  ;;  %v1261_v54 = vmul.f32 %v1257_v16, %v1257_v16 }
 0x1d9   :  { %v1001_v33 = vmul.f32 %v1796_v55, %v2540_v21  ;;  %v1086_v29 = vrot.slane %v994_v41, %v1085_v23  ;;  %v1112_v45 = vsel %vm1066_vm7, %v1111_v48, %v1107_v36  ;;  %v1074_v2 = vsel %vm1073_vm8, %v1072_v11, %v1067_v18 }
 0x1da   :  { %v1117_v32 = vsel %vm1073_vm8, %v1116_v47, %v1112_v45  ;;  %v1081_v26 = vsel %vm1080_vm9, %v1079_v57, %v1074_v2  ;;  %v1260_v17 = vmul.f32 %v1256_v14, %v1256_v14  ;;  %v1266_v27 = vsel %vm1264_vm14, %v1261_v54, 0.0 }
 0x1db   :  { %v1121_v8 = vrot.slane %v1001_v33, %v1078_v30  ;;  %v1088_v50 = vsel %vm1087_vm10, %v1086_v29, %v1081_v26  ;;  %v1258_v33 = vld [vmem:[%s2655_s9 + $0x10] sm:$0xff]  ;;  %v1263_v25 = vmul.f32 %v1259_v59, %v1259_v59  ;;  %vm1399_vm7 = vcmask 123904   ;;  %s1882_s9 = smov [#allocation6]  }
 0x1dc   :  { %v1798_v6 = vpop.eup %1797  ;;  %v1262_v7 = vmul.f32 %v1258_v33, %v1258_v33  ;;  %v1265_v24 = vsel %vm1264_vm14, %v1260_v17, 0.0  ;;  %s1436_s13 = sshll.u32 %s1882_s9, 4  ;;  %s1437_s13 = int_to_ptr.vmem [resolvable:$true] %s1436_s13 }
 0x1dd   :  { %v1002_v21 = vmul.f32 %v1798_v6, %v2543_v22  ;;  %v1122_v22 = vsel %vm1080_vm9, %v1121_v8, %v1117_v32  ;;  %v1267_v11 = vadd.f32 %v1266_v27, %v1265_v24  ;;  %v1270_v1 = vsel %vm1264_vm14, %v1263_v25, 0.0  ;;  %s1827_s14 = scalar_lea.vmem %s1437_s13, 32  ;;  %p1832_p6 = scmp.lt.s32.totalorder %s1437_s13, %s1437_s13 }
 0x1de   :  { %v1268_v47 = vsel %vm1264_vm14, %v1262_v7, 0.0  ;;  %p1828_p5 = scmp.ne.s32.totalorder %s1437_s13, %s1827_s14  ;;  %p1833_p7 = scmp.lt.s32.totalorder %s1827_s14, %s1827_s14 }
 0x1df   :  { %v1126_v60 = vrot.slane %v1002_v21, %v1085_v23  ;;  %v1269_v6 = vadd.f32 %v1268_v47, %v1267_v11 }
 0x1e0   :  { %p1834_p8 = por %p1833_p7, %p1832_p6 }
 0x1e1   :  { %v1127_v62 = vsel %vm1087_vm10, %v1126_v60, %v1122_v22  ;;  %v1271_v57 = vadd.f32 %v1270_v1, %v1269_v6 }
 0x1e2   :  { %v1129_v28 = vsel %vm1128_vm11, %v1127_v62, %v1088_v50  ;;  %p1835_p9 = pnand %p1834_p8, %p1828_p5 }
 0x1e3   :  { %1499 = vmatmul.mubr.msk.f32.vlgmr.msra.gmra.mrb[0].mxu0 %vm1130_vm12, %v1129_v28  ;;  %v1272_v20 = vrot.slane %v1271_v57, 4 }
 0x1e5   :  { %v1273_v8 = vadd.f32 %v1272_v20, %v1271_v57 }
 0x1e7   :  { %v1274_v21 = vrot.slane %v1273_v8, 2 }
 0x1e9   :  { %v1275_v61 = vadd.f32 %v1274_v21, %v1273_v8 }
 0x1eb   :  { %v1276_v29 = vrot.slane %v1275_v61, 1 }
 0x1ed   :  { %v1277_v36 = vadd.f32 %v1276_v29, %v1275_v61 }
 0x1ef   :  { %vm1280_vm15 = vcmp.eq.f32.partialorder %v1277_v36, inf  ;;  %v1283_v2 = vand.u32 2147483648, %v1277_v36  ;;  %vm1282_vm0 = vcmp.eq.f32.partialorder %v1277_v36, 0.0 }
 0x2b6   :  { %v1199_v4 = vpop.f32.mrb[0].mxu0 }
 0x2b7   :  { %v1200_v42 = vadd.f32 %v1459_v12, %v1199_v4  ;;  %v1500_v38 = vpop.f32.mrb[1].mxu0 }
 0x2b9   :  { %v1204_v34 = vsel %vm1203_vm13, %v1200_v42, 0.0 }
 0x2ba   :  { %v1205_v56 = vrot.slane %v1204_v34, 4 }
 0x2bc   :  { %v1206_v9 = vadd.f32 %v1205_v56, %v1204_v34 }
 0x2be   :  { %v1207_v46 = vrot.slane %v1206_v9, 2 }
 0x2c0   :  { %v1208_v44 = vadd.f32 %v1207_v46, %v1206_v9 }
 0x2c2   :  { %v1209_v5 = vrot.slane %v1208_v44, 1 }
 0x2c4   :  { %v1210_v31 = vadd.f32 %v1209_v5, %v1208_v44 }
 0x2c6   :  { %v1212_v43 = vmul.f32 0.5, %v1210_v31 }
 0x2c8   :  { %v1213_v35 = vsub.f32 %v1200_v42, %v1212_v43 }
 0x2ca   :  { %v1214_v58 = vmul.f32 %v1213_v35, %v1213_v35 }
 0x2cc   :  { %v1215_v52 = vsel %vm1203_vm13, %v1214_v58, 0.0 }
 0x2cd   :  { %v1216_v19 = vrot.slane %v1215_v52, 4 }
 0x2cf   :  { %v1217_v40 = vadd.f32 %v1216_v19, %v1215_v52 }
 0x2d1   :  { %v1218_v0 = vrot.slane %v1217_v40, 2 }
 0x2d3   :  { %v1219_v30 = vadd.f32 %v1218_v0, %v1217_v40 }
 0x2d5   :  { %v1220_v39 = vrot.slane %v1219_v30, 1 }
 0x2d7   :  { %v1221_v37 = vadd.f32 %v1220_v39, %v1219_v30 }
 0x2d9   :  { %v1222_v49 = vmul.f32 0.5, %v1221_v37 }
 0x2db   :  { %v1223_v51 = vadd.f32 1e-05, %v1222_v49 }
 0x2dd   :  { %1799 = vrsqrt.f32 %v1223_v51 }
 0x2de   :  { %1801 = vrsqrt.f32 %v1277_v36 }
 0x2e7   :  { %v1800_v23 = vpop.eup %1799 }
 0x2e8   :  { %v1225_v63 = vmul.f32 %v1800_v23, %v1213_v35  ;;  %v1802_v18 = vpop.eup %1801 }
 0x2e9   :  { %v1279_v45 = vmul.f32 %v1802_v18, %v1277_v36 }
 0x2ea   :  { %v1233_v13 = vmul.f32 %v1461_v15, %v1225_v63  ;;  %v1395_v15 = vsub.f32 1.0, %v2477_v53 }
 0x2eb   :  { %v1281_v32 = vsel %vm1280_vm15, %v1277_v36, %v1279_v45 }
 0x2ec   :  { %v1241_v55 = vadd.f32 %v1462_v3, %v1233_v13  ;;  %v1284_v60 = vsel %vm1282_vm0, %v1283_v2, %v1281_v32 }
 0x2ed   :  { %v1285_v26 = vmax.f32 %v1284_v60, 1e-12 }
 0x2ee   :  { %v1242_v41 = vmul.f32 %v1241_v55, %v1241_v55 }
 0x2ef   :  { %1803 = vrcp.f32 %v1285_v26 }
 0x2f0   :  { %v1243_v48 = vsel %vm1203_vm13, %v1242_v41, 0.0 }
 0x2f1   :  { %1244 = vadd.xlane.f32.xlu1 %v1243_v48 }
 0x2f9   :  { %v1804_v22 = vpop.eup %1803 }
 0x2fa   :  { %v1287_v50 = vmul.f32 %v1804_v22, %v1256_v14  ;;  %v1288_v62 = vmul.f32 %v1804_v22, %v1257_v16  ;;  %v1289_v28 = vmul.f32 %v1804_v22, %v1258_v33  ;;  %v1290_v12 = vmul.f32 %v1804_v22, %v1259_v59 }
 0x2fc   :  { %v1525_v4 = vpack.c.bf16 %v1288_v62, %v1287_v50  ;;  %v1528_v42 = vpack.c.bf16 %v1290_v12, %v1289_v28 }
 0x2fe   :  { %1526 = vmatpush3.bf16.msra.mxu1 %v1525_v4 }
 0x2ff   :  { %1527 = vmatprep.subr.bf16.mxu1 %v1879_v10 }
 0x302   :  { %1529 = vmatpush3.bf16.msra.mxu1 %v1528_v42 }
 0x37e   :  { %v1245_v38 = vpop.xlane.xlu1 %1244 }
 0x37f   :  { %1805 = vrsqrt.f32 %v1245_v38  ;;  %vm1248_vm1 = vcmp.eq.f32.partialorder %v1245_v38, inf  ;;  %v1251_v9 = vand.u32 2147483648, %v1245_v38  ;;  %vm1250_vm2 = vcmp.eq.f32.partialorder %v1245_v38, 0.0 }
 0x389   :  { %v1806_v34 = vpop.eup %1805 }
 0x38a   :  { %v1247_v56 = vmul.f32 %v1806_v34, %v1245_v38 }
 0x38c   :  { %v1249_v46 = vsel %vm1248_vm1, %v1245_v38, %v1247_v56 }
 0x38d   :  { %v1252_v44 = vsel %vm1250_vm2, %v1251_v9, %v1249_v46 }
 0x38e   :  { %v1253_v5 = vmax.f32 %v1252_v44, 1e-12 }
 0x390   :  { %1807 = vrcp.f32 %v1253_v5 }
 0x39a   :  { %v1808_v31 = vpop.eup %1807 }
 0x39b   :  { %v1255_v43 = vmul.f32 %v1808_v31, %v1241_v55 }
 0x39d   :  { %1510 = vmatmul.mubr.msk.f32.vlgmr.msra.gmra.mrb[0].mxu1 %vm1291_vm3, %v1255_v43 }
 0x470   :  { %v1361_v35 = vpop.f32.mrb[0].mxu1 }
 0x471   :  { %v1365_v58 = vmul.f32 %v1361_v35, %v1361_v35  ;;  %v1511_v52 = vpop.f32.mrb[1].mxu1  ;;  %v1376_v51 = vmul.f32 0.87758255, %v1361_v35  ;;  %v1464_v3 = vadd.f32 -0.23971277, %v1361_v35  ;;  %v1396_v55 = vmul.f32 %v1395_v15, %v1361_v35 }
 0x472   :  { %vm1379_vm6 = vcmp.gt.f32.partialorder %v1361_v35, -0.87758255 }
 0x473   :  { %v1366_v10 = vsub.f32 1.0, %v1365_v58 }
 0x475   :  { %v1367_v19 = vmax.f32 %v1366_v10, 0.0 }
 0x477   :  { %v1368_v40 = vmin.f32 %v1367_v19, 1.0 }
 0x479   :  { %1809 = vrsqrt.f32 %v1368_v40  ;;  %vm1371_vm4 = vcmp.eq.f32.partialorder %v1368_v40, inf  ;;  %v1374_v39 = vand.u32 2147483648, %v1368_v40  ;;  %vm1373_vm5 = vcmp.eq.f32.partialorder %v1368_v40, 0.0 }
 0x483   :  { %v1810_v0 = vpop.eup %1809 }
 0x484   :  { %v1370_v30 = vmul.f32 %v1810_v0, %v1368_v40 }
 0x486   :  { %v1372_v37 = vsel %vm1371_vm4, %v1368_v40, %v1370_v30 }
 0x487   :  { %v1375_v49 = vsel %vm1373_vm5, %v1374_v39, %v1372_v37 }
 0x488   :  { %v1377_v23 = vmul.f32 0.47942555, %v1375_v49 }
 0x48a   :  { %v1378_v63 = vsub.f32 %v1376_v51, %v1377_v23 }
 0x48c   :  { %v1381_v13 = vsel %vm1379_vm6, %v1378_v63, %v1464_v3 }
 0x48d   :  { %v1394_v14 = vmul.f32 %v2477_v53, %v1381_v13 }
 0x48f   :  { %v1397_v16 = vadd.f32 %v1396_v55, %v1394_v14 }
 0x491   :  { %v1398_v17 = vmul.f32 30.0, %v1397_v16 }
 0x493   :  { %v1401_v54 = vsel %vm1399_vm7, %v1398_v17, -inf  ;;  %1400 = vst.msk [vmem:[#allocation6] sm:$0x3] %vm1399_vm7, %v1398_v17 }
 0x494   :  { %1402 = vmax.xlane.f32.xlu0 %v1401_v54 }
 0x521   :  { %v1403_v41 = vpop.xlane.xlu0 %1402 }
 0x522   :  { %v1404_v33 = vsub.f32 %v1398_v17, %v1403_v41 }
 0x524   :  { %v1405_v7 = vmul.f32 1.442695, %v1404_v33 }
 0x526   :  { %1811 = vpow2.f32 %v1405_v7 }
 0x530   :  { %v1812_v24 = vpop.eup %1811 }
 0x531   :  { %v1407_v27 = vsel %vm1399_vm7, %v1812_v24, 0.0 }
 0x532   :  { %1408 = vadd.xlane.f32.xlu1 %v1407_v27 }
 0x5bf   :  { %v1409_v48 = vpop.xlane.xlu1 %1408 }
 0x5c0   :  { %1813 = vlog2.f32 %v1409_v48 }
 0x5ca   :  { %v1814_v59 = vpop.eup %1813 }
 0x5cb   :  { %v1411_v11 = vmul.f32 0.6931472, %v1814_v59 }
 0x5cd   :  { %v1412_v25 = vadd.f32 %v1411_v11, %v1403_v41 }
 0x5cf   :  { %v1413_v47 = vsub.f32 %v1398_v17, %v1412_v25 }
 0x5d1   :  { %v1414_v6 = vmul.f32 %v1413_v47, %v2477_v53 }
 0x5d3   :  { %v1415_v1 = vsel %vm1399_vm7, %v1414_v6, 0.0 }
 0x5d4   :  { %1416 = vadd.xlane.f32.xlu0 %v1415_v1 }
 0x5d5   :  { %1838 = shalt.err (!%p1835_p9)
}
 0x5d6   :  { %s1839_s17 = scalar_lea.hbm %s2656_s10, 32 }
 0x5d7   :  { %p1840_p10 = scmp.ne.s32.totalorder %s2656_s10, %s1839_s17  ;;  %p1843_p11 = scmp.lt.u32.totalorder %s1839_s17, %s2656_s10 }
 0x5d9   :  { %p1845_p12 = pnand %p1843_p11, %p1840_p10 }
 0x5db   :  { %1848 = shalt.err (!%p1845_p12)
}
 0x5dc   :  { %1439 = dma.vmem_to_hbm [thread:$0]  %s1437_s13, 32, %s2656_s10, [#allocation4]   ;;  %vm1419_vm8 = vcmask 1041408   ;;  %vm1428_vm9 = vcmask 0  }
 0x5dd   :  { %s1883_s24 = smov [#allocation7]  }
 0x5de   :  { %s1446_s25 = sshll.u32 %s1883_s24, 4  ;;  %s1447_s25 = int_to_ptr.vmem [resolvable:$true] %s1446_s25 }
 0x5df   :  { %s1849_s5 = scalar_lea.vmem %s1447_s25, 16  ;;  %s1853_s1 = scalar_lea.vmem %s1447_s25, 32 }
 0x5e0   :  { %p1850_p13 = scmp.ne.s32.totalorder %s1447_s25, %s1849_s5  ;;  %p1854_p0 = scmp.lt.s32.totalorder %s1447_s25, %s1447_s25 }
 0x5e1   :  { %p1855_p1 = scmp.lt.s32.totalorder %s1853_s1, %s1849_s5 }
 0x5e3   :  { %p1856_p2 = por %p1855_p1, %p1854_p0 }
 0x5e5   :  { %p1857_p3 = pnand %p1856_p2, %p1850_p13 }
 0x661   :  { %v1417_v53 = vpop.xlane.xlu0 %1416 }
 0x662   :  { %v1418_v57 = vsub.f32 0.0, %v1417_v53 }
 0x664   :  { %v1420_v20 = vsel %vm1419_vm8, %v1418_v57, 0.0 }
 0x665   :  { %v1421_v8 = vrot.slane %v1420_v20, 4 }
 0x667   :  { %v1422_v21 = vadd.f32 %v1421_v8, %v1420_v20 }
 0x669   :  { %v1423_v61 = vrot.slane %v1422_v21, 2 }
 0x66b   :  { %v1424_v29 = vadd.f32 %v1423_v61, %v1422_v21 }
 0x66d   :  { %v1425_v36 = vrot.slane %v1424_v29, 1 }
 0x66f   :  { %v1426_v18 = vadd.f32 %v1425_v36, %v1424_v29 }
 0x671   :  { %v1427_v45 = vmul.f32 0.5, %v1426_v18 }
 0x673   :  { %1429 = vst.msk [vmem:[#allocation7] sm:$0x1] %vm1428_vm9, %v1427_v45 }
 0x674   :  { %1860 = shalt.err (!%p1857_p3)
}
 0x675   :  { %s1861_s6 = scalar_lea.hbm %s2657_s11, 16 }
 0x676   :  { %p1862_p4 = scmp.ne.s32.totalorder %s2657_s11, %s1861_s6  ;;  %p1865_p5 = scmp.lt.u32.totalorder %s1861_s6, %s2657_s11 }
 0x678   :  { %p1867_p6 = pnand %p1865_p5, %p1862_p4 }
 0x67a   :  { %1870 = shalt.err (!%p1867_p6)
}
 0x67b   :  { %1449 = dma.vmem_to_hbm [thread:$0]  %s1447_s25, 16, %s2657_s11, [#allocation8]  }
 0x67c   :  { %1873 = dma.done.wait [#allocation4], 32  }
 0x67d   :  { %1874 = vsyncadd [#allocation4], 4294967264 }
 0x67e   :  { %1875 = dma.done.wait [#allocation8], 16  }
 0x67f   :  { %1876 = vsyncadd [#allocation8], 4294967280 }
 0x680   :  { %1456 = vsyncpa [#allocation4], 1 }
 0x681   :  { %1457 = vsyncpa [#allocation8], 1 }
 0x682   :  { %1458 = vsyncpa [#allocation5], 1 }

</bundles_post_ra>
